<compile_context>
chip_gen: v7x
topology: tpu7x:2x2x1
jax: 0.10.0
libtpu: 0.0.40
codegen_flags: <defaults>
</compile_context>

<pallas_src>
import jax
import jax.numpy as jnp
from jax import lax
from jax.experimental import pallas as pl
from jax.experimental.pallas import tpu as pltpu


LANE = 128  # TPU lane width; each GRU gate is padded to this many lanes.


# ---------------------------------------------------------------------------
# Kernel 1: fused  tanh(x @ W_fc + b_fc) @ W_ih_pad + b_pad   (row-tiled)
# ---------------------------------------------------------------------------
def fc_gates_kernel(x_ref, wfc_ref, bfc_ref, wih_ref, bih_ref, xg_ref):
    # bf16 operands on the MXU, f32 accumulation; elementwise math in f32.
    h_mid = jnp.tanh(
        jnp.dot(x_ref[...], wfc_ref[...], preferred_element_type=jnp.float32)
        + bfc_ref[...]
    )
    xg = (
        jnp.dot(h_mid.astype(jnp.bfloat16), wih_ref[...],
                preferred_element_type=jnp.float32)
        + bih_ref[...]
    )
    xg_ref[...] = xg.astype(xg_ref.dtype)      # lane-dense bf16 store (3*HP)


def _fc_row_tile(n_rows, in_dim, mid_dim, out_dim,
                 budget_bytes=6 * 1024 * 1024):
    """Largest row tile whose VMEM working set fits the budget.

    Counts the double-buffered bf16 input/output slabs plus the f32 h_mid
    intermediate materialized between the two matmuls.  Stays well under the
    smallest default scoped-VMEM limits (v5e: 16 MiB scoped; v7x: 32 MiB
    scoped / 64 MiB physical) even after adding the VMEM-resident weights.
    """
    per_row = 2 * (2 * in_dim) + 4 * mid_dim + 2 * (2 * out_dim)
    tile = max(16, min(512, budget_bytes // per_row))
    tile = (tile // 16) * 16                   # bf16-friendly sublane align
    if n_rows <= tile:
        return n_rows                          # full extent is always legal
    return tile


def fc_gates(x_flat_bf16, w_fc_bf16, b_fc_row, w_ih_pad_bf16, b_ih_pad_row):
    n, in_dim = x_flat_bf16.shape
    mid = w_fc_bf16.shape[1]
    out_dim = w_ih_pad_bf16.shape[1]           # 3 * HP, multiple of 128
    tile_n = _fc_row_tile(n, in_dim, mid, out_dim)
    grid = (pl.cdiv(n, tile_n),)

    cost = pl.CostEstimate(
        flops=2 * n * (in_dim * mid + mid * out_dim),
        transcendentals=n * mid,
        bytes_accessed=2 * n * (in_dim + out_dim)
        + 2 * (in_dim * mid + mid * out_dim)
        + 4 * (mid + out_dim),
    )

    # NOTE: boundary row tiles (n % tile_n != 0) compute on padded/undefined
    # rows; rows are independent and OOB writes are dropped, so this is safe.
    return pl.pallas_call(
        fc_gates_kernel,
        out_shape=jax.ShapeDtypeStruct((n, out_dim), jnp.bfloat16),
        grid_spec=pltpu.PrefetchScalarGridSpec(
            num_scalar_prefetch=0,
            grid=grid,
            in_specs=[
                pl.BlockSpec((tile_n, in_dim), lambda i: (i, 0)),
                # Weights / biases: constant index maps -> VMEM-resident.
                pl.BlockSpec((in_dim, mid), lambda i: (0, 0)),
                pl.BlockSpec((1, mid), lambda i: (0, 0)),
                pl.BlockSpec((mid, out_dim), lambda i: (0, 0)),
                pl.BlockSpec((1, out_dim), lambda i: (0, 0)),
            ],
            out_specs=pl.BlockSpec((tile_n, out_dim), lambda i: (i, 0)),
        ),
        compiler_params=pltpu.CompilerParams(
            dimension_semantics=("parallel",),
            vmem_limit_bytes=32 * 1024 * 1024,
        ),
        cost_estimate=cost,
    )(x_flat_bf16, w_fc_bf16, b_fc_row, w_ih_pad_bf16, b_ih_pad_row)


# ---------------------------------------------------------------------------
# Kernel 2: GRU recurrence — gates padded to 128 lanes, r|z fused
#   grid = (batch tiles ["parallel"], time chunks ["arbitrary"])
# ---------------------------------------------------------------------------
def gru_kernel(xg_ref, whh_ref, bhn_ref, out_ref, h_ref):
    t_chunk_idx = pl.program_id(1)

    @pl.when(t_chunk_idx == 0)
    def _():
        h_ref[...] = jnp.zeros_like(h_ref)

    tile_b, hp = h_ref.shape                     # hp = padded gate width (128k)
    hid = out_ref.shape[-1]                      # true hidden size
    t_chunk = xg_ref.shape[1]

    whh = whh_ref[...]                           # (HP, 3*HP) bf16, VMEM
    # Hoisted bias broadcast: JAX does not CSE broadcast_in_dim, so doing this
    # inside the unrolled loop would re-materialize it every step.
    bhn = jnp.broadcast_to(bhn_ref[...], (tile_b, hp))   # b_hn only
    h = h_ref[...]                               # (tile_b, HP) f32 carry
                                                 # padding lanes stay 0

    # Moderate static unroll (t_chunk <= 16): LLO scheduler overlaps MXU
    # (h @ Whh) with EUP (sigmoid/tanh) across steps without blowing up
    # live ranges / code size.
    # TODO(synk): the per-step xg_ref[:, t, :] loads / out_ref[:, t, :] stores
    # are 1-of-t_chunk sublane-strided; a time-major VMEM staging scratch
    # (one transpose per chunk each way) would make them dense.
    for t in range(t_chunk):
        xg = xg_ref[:, t, :].astype(jnp.float32)     # (tile_b, 3*HP), [r|z|n]
        hg = jnp.dot(h.astype(jnp.bfloat16), whh,
                     preferred_element_type=jnp.float32)
        # Fused r|z: one sigmoid over two lane-aligned gate blocks
        # (b_hr/b_hz were folded into xg by kernel 1).
        rz = jax.nn.sigmoid(xg[:, :2 * hp] + hg[:, :2 * hp])
        r = rz[:, :hp]
        z = rz[:, hp:]
        n = jnp.tanh(xg[:, 2 * hp:] + r * (hg[:, 2 * hp:] + bhn))
        h = n + z * (h - n)                          # == (1-z)*n + z*h
        out_ref[:, t, :] = h[:, :hid]                # batch-first output
    h_ref[...] = h                                   # persist across chunks


def gru_scan(xg_bth, w_hh_pad_bf16, b_hn_row, hid, *,
             max_batch_tile=128, max_time_chunk=16):
    batch, seq_len, three_hp = xg_bth.shape
    hp = three_hp // 3

    tile_b = min(batch, max_batch_tile)
    # v7x has 2 TensorCores: give the "parallel" batch axis >= 2 grid points
    # when the batch allows it so both cores get work.
    if batch >= 16:
        tile_b = min(tile_b, pl.cdiv(batch, 2))
    t_chunk = min(seq_len, max_time_chunk)

    # VMEM-aware sizing: double-buffered in/out blocks + hidden scratch must
    # stay well under the smallest scoped-VMEM budget (v5e default 16 MiB).
    def _block_bytes(tb, tc):
        return 2 * (tb * tc * three_hp * 2 + tb * tc * hid * 4) + tb * hp * 4
    while tile_b > 8 and _block_bytes(tile_b, t_chunk) > 6 * 1024 * 1024:
        tile_b = max(8, tile_b // 2)

    grid = (pl.cdiv(batch, tile_b), pl.cdiv(seq_len, t_chunk))

    cost = pl.CostEstimate(
        flops=2 * batch * seq_len * hp * three_hp,
        transcendentals=batch * seq_len * three_hp,
        bytes_accessed=2 * batch * seq_len * three_hp
        + 4 * batch * seq_len * hid
        + 2 * hp * three_hp + 4 * hp,
    )

    return pl.pallas_call(
        gru_kernel,
        out_shape=jax.ShapeDtypeStruct((batch, seq_len, hid), jnp.float32),
        grid_spec=pltpu.PrefetchScalarGridSpec(
            num_scalar_prefetch=0,
            grid=grid,
            in_specs=[
                pl.BlockSpec((tile_b, t_chunk, three_hp),
                             lambda b, t: (b, t, 0)),
                pl.BlockSpec((hp, three_hp), lambda b, t: (0, 0)),
                pl.BlockSpec((1, hp), lambda b, t: (0, 0)),
            ],
            out_specs=pl.BlockSpec((tile_b, t_chunk, hid),
                                   lambda b, t: (b, t, 0)),
            scratch_shapes=[pltpu.VMEM((tile_b, hp), jnp.float32)],
        ),
        compiler_params=pltpu.CompilerParams(
            # Batch tiles are independent (megacore-shardable); the recurrence
            # carries the hidden state across time chunks -> sequential axis.
            dimension_semantics=("parallel", "arbitrary"),
            vmem_limit_bytes=32 * 1024 * 1024,
        ),
        cost_estimate=cost,
    )(xg_bth, w_hh_pad_bf16, b_hn_row)


# ---------------------------------------------------------------------------
# Wrapper: Source_Encoder forward (reshapes only, no XLA transposes)
# ---------------------------------------------------------------------------
def _pad_gate_cols(w, hid, hp):
    """(..., 3*hid) -> (..., 3*hp): each gate block zero-padded to hp lanes."""
    pad = hp - hid
    blocks = []
    for g in range(3):
        blk = w[..., g * hid:(g + 1) * hid]
        blocks.append(jnp.pad(blk, [(0, 0)] * (w.ndim - 1) + [(0, pad)]))
    return jnp.concatenate(blocks, axis=-1)


def source_encoder_forward(source_text, params):
    """source_text: (B, T, in_dim) -> (B, T, hid), batch_first (PyTorch GRU)."""
    batch, seq_len, in_dim = source_text.shape
    hid = params["w_hh_t"].shape[0]
    hp = ((hid + LANE - 1) // LANE) * LANE         # per-gate padded width

    # --- pack / pad weights (tiny ops, negligible next to the kernels) -----
    w_fc = params["w_fc"].astype(jnp.bfloat16)
    b_fc = params["b_fc"].reshape(1, -1).astype(jnp.float32)

    # Fold b_hr / b_hz into the input-gate bias; b_hn must stay inside
    # r * (W_hn h + b_hn) and is applied in the recurrence kernel.
    b_ih, b_hh = params["b_ih"], params["b_hh"]
    b_comb = jnp.concatenate([b_ih[:2 * hid] + b_hh[:2 * hid], b_ih[2 * hid:]])
    w_ih_pad = _pad_gate_cols(params["w_ih_t"], hid, hp).astype(jnp.bfloat16)
    b_ih_pad = _pad_gate_cols(b_comb[None, :], hid, hp).astype(jnp.float32)

    w_hh_pad = _pad_gate_cols(params["w_hh_t"], hid, hp)
    w_hh_pad = jnp.pad(w_hh_pad, ((0, hp - hid), (0, 0))).astype(jnp.bfloat16)
    b_hn_pad = jnp.pad(b_hh[2 * hid:], (0, hp - hid)
                       ).reshape(1, hp).astype(jnp.float32)

    # --- kernel 1: fc + tanh + input-gate projection (bf16 I/O) ------------
    x_flat = source_text.reshape(batch * seq_len, in_dim).astype(jnp.bfloat16)
    xg_flat = fc_gates(x_flat, w_fc, b_fc, w_ih_pad, b_ih_pad)   # (B*T, 3*HP)

    # --- kernel 2: GRU recurrence, batch-first output ------------------------
    xg = xg_flat.reshape(batch, seq_len, 3 * hp)                 # free reshape
    return gru_scan(xg, w_hh_pad, b_hn_pad, hid)                 # (B, T, hid)


# ---------------------------------------------------------------------------
# Pure-JAX f32 reference (same math as torch.nn.Linear + torch.nn.GRU)
# ---------------------------------------------------------------------------
def reference_forward(source_text, params):
    h_mid = jnp.tanh(source_text @ params["w_fc"] + params["b_fc"])
    xg = h_mid @ params["w_ih_t"] + params["b_ih"]        # (B, T, 3H)
    hid = params["w_hh_t"].shape[0]
    batch = source_text.shape[0]

    def step(h, xg_t):
        hg = h @ params["w_hh_t"] + params["b_hh"]
        r = jax.nn.sigmoid(xg_t[:, :hid] + hg[:, :hid])
        z = jax.nn.sigmoid(xg_t[:, hid:2 * hid] + hg[:, hid:2 * hid])
        n = jnp.tanh(xg_t[:, 2 * hid:] + r * hg[:, 2 * hid:])
        h_new = (1.0 - z) * n + z * h
        return h_new, h_new

    h0 = jnp.zeros((batch, hid), jnp.float32)
    _, out = lax.scan(step, h0, jnp.swapaxes(xg, 0, 1))   # (T, B, H)
    return jnp.swapaxes(out, 0, 1)


def init_params(key, in_dim, mid_dim, hid_dim):
    ks = jax.random.split(key, 6)
    scale = 0.1
    return {
        # Linear(in_dim, mid_dim): stored transposed, x @ w_fc
        "w_fc": scale * jax.random.normal(ks[0], (in_dim, mid_dim), jnp.float32),
        "b_fc": scale * jax.random.normal(ks[1], (mid_dim,), jnp.float32),
        # GRU weight_ih_l0^T: (mid_dim, 3*hid), gate order [r|z|n]
        "w_ih_t": scale * jax.random.normal(ks[2], (mid_dim, 3 * hid_dim), jnp.float32),
        "b_ih": scale * jax.random.normal(ks[3], (3 * hid_dim,), jnp.float32),
        # GRU weight_hh_l0^T: (hid, 3*hid)
        "w_hh_t": scale * jax.random.normal(ks[4], (hid_dim, 3 * hid_dim), jnp.float32),
        "b_hh": scale * jax.random.normal(ks[5], (3 * hid_dim,), jnp.float32),
    }


if __name__ == "__main__":
    # Small shapes consistent with the module (mid/hid use the module defaults).
    B, T, IN_DIM, MID_DIM, HID_DIM = 2, 8, 64, 256, 32

    key = jax.random.PRNGKey(0)
    k_x, k_p = jax.random.split(key)
    params = init_params(k_p, IN_DIM, MID_DIM, HID_DIM)
    source_text = jax.random.normal(k_x, (B, T, IN_DIM), jnp.float32)

    fwd = jax.jit(source_encoder_forward)
    out = jax.block_until_ready(fwd(source_text, params))

    ref = jax.block_until_ready(reference_forward(source_text, params))
    assert out.shape == (B, T, HID_DIM)
    # Kernels use bf16 MXU operands / bf16 xg intermediate with f32
    # accumulation; compare against the all-f32 reference with a relaxed
    # tolerance (fine at T=8; error accumulates with sequence length).
    assert jnp.allclose(out, ref, atol=5e-2, rtol=5e-2), "mismatch vs reference"

    print("KERNEL_OK")
</pallas_src>

<mosaic_0001>
module attributes {stable_mosaic.version = 11 : i64} {
  func.func @fc_gates_kernel(%arg0: i32, %arg1: memref<16x64xbf16, #tpu.memory_space<vmem>>, %arg2: memref<64x256xbf16, #tpu.memory_space<vmem>>, %arg3: memref<1x256xf32, #tpu.memory_space<vmem>>, %arg4: memref<256x384xbf16, #tpu.memory_space<vmem>>, %arg5: memref<1x384xf32, #tpu.memory_space<vmem>>, %arg6: memref<16x384xbf16, #tpu.memory_space<vmem>>) attributes {dimension_semantics = [#tpu.dimension_semantics<parallel>], iteration_bounds = array<i64: 1>, scalar_prefetch = 0 : i64, scratch_operands = 0 : i64, tpu.core_type = #tpu.core_type<tc>, window_params = [{transform_indices = @transform_0, window_bounds = array<i64: 16, 64>}, {pipeline_mode = #tpu.pipeline_mode<synchronous>, transform_indices = @transform_1, window_bounds = array<i64: 64, 256>}, {pipeline_mode = #tpu.pipeline_mode<synchronous>, transform_indices = @transform_2, window_bounds = array<i64: 1, 256>}, {pipeline_mode = #tpu.pipeline_mode<synchronous>, transform_indices = @transform_3, window_bounds = array<i64: 256, 384>}, {pipeline_mode = #tpu.pipeline_mode<synchronous>, transform_indices = @transform_4, window_bounds = array<i64: 1, 384>}, {transform_indices = @transform_5, window_bounds = array<i64: 16, 384>}]} {
    %c0 = arith.constant 0 : index
    %c0_0 = arith.constant 0 : index
    %0 = vector.load %arg1[%c0, %c0_0] : memref<16x64xbf16, #tpu.memory_space<vmem>>, vector<16x64xbf16>
    %c0_1 = arith.constant 0 : index
    %c0_2 = arith.constant 0 : index
    %1 = vector.load %arg2[%c0_1, %c0_2] : memref<64x256xbf16, #tpu.memory_space<vmem>>, vector<64x256xbf16>
    %cst = arith.constant dense<0.000000e+00> : vector<16x256xf32>
    %2 = tpu.matmul %0, %1, %cst {dimension_numbers = #tpu.dot_dimension_numbers<[1], [0], [0], [1], [0, 0, 1, 1], [], []>} : vector<16x64xbf16>, vector<64x256xbf16>, vector<16x256xf32> -> vector<16x256xf32>
    %c0_3 = arith.constant 0 : index
    %c0_4 = arith.constant 0 : index
    %3 = vector.load %arg3[%c0_3, %c0_4] : memref<1x256xf32, #tpu.memory_space<vmem>>, vector<1x256xf32>
    %4 = vector.broadcast %3 : vector<1x256xf32> to vector<16x256xf32>
    %5 = arith.addf %2, %4 : vector<16x256xf32>
    %6 = math.tanh %5 : vector<16x256xf32>
    %7 = arith.truncf %6 : vector<16x256xf32> to vector<16x256xbf16>
    %c0_5 = arith.constant 0 : index
    %c0_6 = arith.constant 0 : index
    %8 = vector.load %arg4[%c0_5, %c0_6] : memref<256x384xbf16, #tpu.memory_space<vmem>>, vector<256x384xbf16>
    %cst_7 = arith.constant dense<0.000000e+00> : vector<16x384xf32>
    %9 = tpu.matmul %7, %8, %cst_7 {dimension_numbers = #tpu.dot_dimension_numbers<[1], [0], [0], [1], [0, 0, 1, 1], [], []>} : vector<16x256xbf16>, vector<256x384xbf16>, vector<16x384xf32> -> vector<16x384xf32>
    %c0_8 = arith.constant 0 : index
    %c0_9 = arith.constant 0 : index
    %10 = vector.load %arg5[%c0_8, %c0_9] : memref<1x384xf32, #tpu.memory_space<vmem>>, vector<1x384xf32>
    %11 = vector.broadcast %10 : vector<1x384xf32> to vector<16x384xf32>
    %12 = arith.addf %9, %11 : vector<16x384xf32>
    %13 = arith.truncf %12 : vector<16x384xf32> to vector<16x384xbf16>
    %c0_10 = arith.constant 0 : index
    %c0_11 = arith.constant 0 : index
    %14 = vector.load %arg6[%c0_10, %c0_11] : memref<16x384xbf16, #tpu.memory_space<vmem>>, vector<16x384xbf16>
    tpu.vector_store %arg6[%c0_10, %c0_11], %13 {strides = array<i32>} : memref<16x384xbf16, #tpu.memory_space<vmem>>, vector<16x384xbf16>,
    return
  }
  func.func @transform_0(%arg0: i32) -> (i32, i32) {
    %c0_i32 = arith.constant 0 : i32
    %c0_i32_0 = arith.constant 0 : i32
    return %arg0, %c0_i32 : i32, i32
  }
  func.func @transform_1(%arg0: i32) -> (i32, i32) {
    %c0_i32 = arith.constant 0 : i32
    %c0_i32_0 = arith.constant 0 : i32
    %c0_i32_1 = arith.constant 0 : i32
    return %c0_i32, %c0_i32_0 : i32, i32
  }
  func.func @transform_2(%arg0: i32) -> (i32, i32) {
    %c0_i32 = arith.constant 0 : i32
    %c0_i32_0 = arith.constant 0 : i32
    %c0_i32_1 = arith.constant 0 : i32
    return %c0_i32, %c0_i32_0 : i32, i32
  }
  func.func @transform_3(%arg0: i32) -> (i32, i32) {
    %c0_i32 = arith.constant 0 : i32
    %c0_i32_0 = arith.constant 0 : i32
    %c0_i32_1 = arith.constant 0 : i32
    return %c0_i32, %c0_i32_0 : i32, i32
  }
  func.func @transform_4(%arg0: i32) -> (i32, i32) {
    %c0_i32 = arith.constant 0 : i32
    %c0_i32_0 = arith.constant 0 : i32
    %c0_i32_1 = arith.constant 0 : i32
    return %c0_i32, %c0_i32_0 : i32, i32
  }
  func.func @transform_5(%arg0: i32) -> (i32, i32) {
    %c0_i32 = arith.constant 0 : i32
    %c0_i32_0 = arith.constant 0 : i32
    return %arg0, %c0_i32 : i32, i32
  }
}

module attributes {stable_mosaic.version = 11 : i64} {
  func.func @gru_kernel(%arg0: i32, %arg1: i32, %arg2: memref<2x8x384xbf16, #tpu.memory_space<vmem>>, %arg3: memref<128x384xbf16, #tpu.memory_space<vmem>>, %arg4: memref<1x128xf32, #tpu.memory_space<vmem>>, %arg5: memref<2x8x32xf32, #tpu.memory_space<vmem>>, %arg6: memref<2x128xf32, #tpu.memory_space<vmem>>) attributes {dimension_semantics = [#tpu.dimension_semantics<parallel>, #tpu.dimension_semantics<arbitrary>], iteration_bounds = array<i64: 1, 1>, scalar_prefetch = 0 : i64, scratch_operands = 1 : i64, tpu.core_type = #tpu.core_type<tc>, window_params = [{transform_indices = @transform_0, window_bounds = array<i64: 2, 8, 384>}, {pipeline_mode = #tpu.pipeline_mode<synchronous>, transform_indices = @transform_1, window_bounds = array<i64: 128, 384>}, {pipeline_mode = #tpu.pipeline_mode<synchronous>, transform_indices = @transform_2, window_bounds = array<i64: 1, 128>}, {transform_indices = @transform_3, window_bounds = array<i64: 2, 8, 32>}]} {
    %c0_i32 = arith.constant 0 : i32
    %0 = arith.cmpi eq, %arg1, %c0_i32 : i32
    %1 = arith.extui %0 : i1 to i32
    %c0_i32_0 = arith.constant 0 : i32
    %2 = arith.cmpi ne, %1, %c0_i32_0 : i32
    scf.if %2 {
      %cst_64 = arith.constant 0.000000e+00 : f32
      %233 = vector.broadcast %cst_64 : f32 to vector<2x128xf32>
      %c0_65 = arith.constant 0 : index
      %c0_66 = arith.constant 0 : index
      %234 = vector.load %arg6[%c0_65, %c0_66] : memref<2x128xf32, #tpu.memory_space<vmem>>, vector<2x128xf32>
      tpu.vector_store %arg6[%c0_65, %c0_66], %233 {strides = array<i32>} : memref<2x128xf32, #tpu.memory_space<vmem>>, vector<2x128xf32>,
    } else {
    }
    %c0 = arith.constant 0 : index
    %c0_1 = arith.constant 0 : index
    %3 = vector.load %arg3[%c0, %c0_1] : memref<128x384xbf16, #tpu.memory_space<vmem>>, vector<128x384xbf16>
    %c0_2 = arith.constant 0 : index
    %c0_3 = arith.constant 0 : index
    %4 = vector.load %arg4[%c0_2, %c0_3] : memref<1x128xf32, #tpu.memory_space<vmem>>, vector<1x128xf32>
    %5 = vector.shape_cast %4 : vector<1x128xf32> to vector<1x128xf32>
    %6 = vector.broadcast %5 : vector<1x128xf32> to vector<2x128xf32>
    %c0_4 = arith.constant 0 : index
    %c0_5 = arith.constant 0 : index
    %7 = vector.load %arg6[%c0_4, %c0_5] : memref<2x128xf32, #tpu.memory_space<vmem>>, vector<2x128xf32>
    %c0_6 = arith.constant 0 : index
    %c0_7 = arith.constant 0 : index
    %c0_8 = arith.constant 0 : index
    %8 = vector.load %arg2[%c0_6, %c0_7, %c0_8] : memref<2x8x384xbf16, #tpu.memory_space<vmem>>, vector<2x1x384xbf16>
    %9 = vector.shape_cast %8 : vector<2x1x384xbf16> to vector<2x384xbf16>
    %10 = arith.extf %9 : vector<2x384xbf16> to vector<2x384xf32>
    %11 = arith.truncf %7 : vector<2x128xf32> to vector<2x128xbf16>
    %cst = arith.constant dense<0.000000e+00> : vector<2x384xf32>
    %12 = tpu.matmul %11, %3, %cst {dimension_numbers = #tpu.dot_dimension_numbers<[1], [0], [0], [1], [0, 0, 1, 1], [], []>} : vector<2x128xbf16>, vector<128x384xbf16>, vector<2x384xf32> -> vector<2x384xf32>
    %13 = vector.extract_strided_slice %10 {offsets = [0, 0], sizes = [2, 256], strides = [1, 1]} : vector<2x384xf32> to vector<2x256xf32>
    %14 = vector.extract_strided_slice %12 {offsets = [0, 0], sizes = [2, 256], strides = [1, 1]} : vector<2x384xf32> to vector<2x256xf32>
    %15 = arith.addf %13, %14 : vector<2x256xf32>
    %16 = arith.negf %15 : vector<2x256xf32>
    %17 = math.exp %16 : vector<2x256xf32>
    %cst_9 = arith.constant 1.000000e+00 : f32
    %18 = vector.broadcast %cst_9 : f32 to vector<2x256xf32>
    %19 = arith.addf %18, %17 : vector<2x256xf32>
    %20 = arith.divf %18, %19 : vector<2x256xf32>
    %21 = vector.extract_strided_slice %20 {offsets = [0, 0], sizes = [2, 128], strides = [1, 1]} : vector<2x256xf32> to vector<2x128xf32>
    %22 = vector.extract_strided_slice %20 {offsets = [0, 128], sizes = [2, 128], strides = [1, 1]} : vector<2x256xf32> to vector<2x128xf32>
    %23 = vector.extract_strided_slice %10 {offsets = [0, 256], sizes = [2, 128], strides = [1, 1]} : vector<2x384xf32> to vector<2x128xf32>
    %24 = vector.extract_strided_slice %12 {offsets = [0, 256], sizes = [2, 128], strides = [1, 1]} : vector<2x384xf32> to vector<2x128xf32>
    %25 = arith.addf %24, %6 : vector<2x128xf32>
    %26 = arith.mulf %21, %25 : vector<2x128xf32>
    %27 = arith.addf %23, %26 : vector<2x128xf32>
    %28 = math.tanh %27 : vector<2x128xf32>
    %29 = arith.subf %7, %28 : vector<2x128xf32>
    %30 = arith.mulf %22, %29 : vector<2x128xf32>
    %31 = arith.addf %28, %30 : vector<2x128xf32>
    %32 = vector.extract_strided_slice %31 {offsets = [0, 0], sizes = [2, 32], strides = [1, 1]} : vector<2x128xf32> to vector<2x32xf32>
    %c0_10 = arith.constant 0 : index
    %c0_11 = arith.constant 0 : index
    %c0_12 = arith.constant 0 : index
    %33 = vector.load %arg5[%c0_10, %c0_11, %c0_12] : memref<2x8x32xf32, #tpu.memory_space<vmem>>, vector<2x1x32xf32>
    %34 = vector.shape_cast %33 : vector<2x1x32xf32> to vector<2x32xf32>
    %35 = vector.shape_cast %32 : vector<2x32xf32> to vector<2x1x32xf32>
    tpu.vector_store %arg5[%c0_10, %c0_11, %c0_12], %35 {strides = array<i32>} : memref<2x8x32xf32, #tpu.memory_space<vmem>>, vector<2x1x32xf32>,
    %c0_13 = arith.constant 0 : index
    %c1 = arith.constant 1 : index
    %c0_14 = arith.constant 0 : index
    %36 = vector.load %arg2[%c0_13, %c1, %c0_14] : memref<2x8x384xbf16, #tpu.memory_space<vmem>>, vector<2x1x384xbf16>
    %37 = vector.shape_cast %36 : vector<2x1x384xbf16> to vector<2x384xbf16>
    %38 = arith.extf %37 : vector<2x384xbf16> to vector<2x384xf32>
    %39 = arith.truncf %31 : vector<2x128xf32> to vector<2x128xbf16>
    %cst_15 = arith.constant dense<0.000000e+00> : vector<2x384xf32>
    %40 = tpu.matmul %39, %3, %cst_15 {dimension_numbers = #tpu.dot_dimension_numbers<[1], [0], [0], [1], [0, 0, 1, 1], [], []>} : vector<2x128xbf16>, vector<128x384xbf16>, vector<2x384xf32> -> vector<2x384xf32>
    %41 = vector.extract_strided_slice %38 {offsets = [0, 0], sizes = [2, 256], strides = [1, 1]} : vector<2x384xf32> to vector<2x256xf32>
    %42 = vector.extract_strided_slice %40 {offsets = [0, 0], sizes = [2, 256], strides = [1, 1]} : vector<2x384xf32> to vector<2x256xf32>
    %43 = arith.addf %41, %42 : vector<2x256xf32>
    %44 = arith.negf %43 : vector<2x256xf32>
    %45 = math.exp %44 : vector<2x256xf32>
    %cst_16 = arith.constant 1.000000e+00 : f32
    %46 = vector.broadcast %cst_16 : f32 to vector<2x256xf32>
    %47 = arith.addf %46, %45 : vector<2x256xf32>
    %48 = arith.divf %46, %47 : vector<2x256xf32>
    %49 = vector.extract_strided_slice %48 {offsets = [0, 0], sizes = [2, 128], strides = [1, 1]} : vector<2x256xf32> to vector<2x128xf32>
    %50 = vector.extract_strided_slice %48 {offsets = [0, 128], sizes = [2, 128], strides = [1, 1]} : vector<2x256xf32> to vector<2x128xf32>
    %51 = vector.extract_strided_slice %38 {offsets = [0, 256], sizes = [2, 128], strides = [1, 1]} : vector<2x384xf32> to vector<2x128xf32>
    %52 = vector.extract_strided_slice %40 {offsets = [0, 256], sizes = [2, 128], strides = [1, 1]} : vector<2x384xf32> to vector<2x128xf32>
    %53 = arith.addf %52, %6 : vector<2x128xf32>
    %54 = arith.mulf %49, %53 : vector<2x128xf32>
    %55 = arith.addf %51, %54 : vector<2x128xf32>
    %56 = math.tanh %55 : vector<2x128xf32>
    %57 = arith.subf %31, %56 : vector<2x128xf32>
    %58 = arith.mulf %50, %57 : vector<2x128xf32>
    %59 = arith.addf %56, %58 : vector<2x128xf32>
    %60 = vector.extract_strided_slice %59 {offsets = [0, 0], sizes = [2, 32], strides = [1, 1]} : vector<2x128xf32> to vector<2x32xf32>
    %c0_17 = arith.constant 0 : index
    %c1_18 = arith.constant 1 : index
    %c0_19 = arith.constant 0 : index
    %61 = vector.load %arg5[%c0_17, %c1_18, %c0_19] : memref<2x8x32xf32, #tpu.memory_space<vmem>>, vector<2x1x32xf32>
    %62 = vector.shape_cast %61 : vector<2x1x32xf32> to vector<2x32xf32>
    %63 = vector.shape_cast %60 : vector<2x32xf32> to vector<2x1x32xf32>
    tpu.vector_store %arg5[%c0_17, %c1_18, %c0_19], %63 {strides = array<i32>} : memref<2x8x32xf32, #tpu.memory_space<vmem>>, vector<2x1x32xf32>,
    %c0_20 = arith.constant 0 : index
    %c2 = arith.constant 2 : index
    %c0_21 = arith.constant 0 : index
    %64 = vector.load %arg2[%c0_20, %c2, %c0_21] : memref<2x8x384xbf16, #tpu.memory_space<vmem>>, vector<2x1x384xbf16>
    %65 = vector.shape_cast %64 : vector<2x1x384xbf16> to vector<2x384xbf16>
    %66 = arith.extf %65 : vector<2x384xbf16> to vector<2x384xf32>
    %67 = arith.truncf %59 : vector<2x128xf32> to vector<2x128xbf16>
    %cst_22 = arith.constant dense<0.000000e+00> : vector<2x384xf32>
    %68 = tpu.matmul %67, %3, %cst_22 {dimension_numbers = #tpu.dot_dimension_numbers<[1], [0], [0], [1], [0, 0, 1, 1], [], []>} : vector<2x128xbf16>, vector<128x384xbf16>, vector<2x384xf32> -> vector<2x384xf32>
    %69 = vector.extract_strided_slice %66 {offsets = [0, 0], sizes = [2, 256], strides = [1, 1]} : vector<2x384xf32> to vector<2x256xf32>
    %70 = vector.extract_strided_slice %68 {offsets = [0, 0], sizes = [2, 256], strides = [1, 1]} : vector<2x384xf32> to vector<2x256xf32>
    %71 = arith.addf %69, %70 : vector<2x256xf32>
    %72 = arith.negf %71 : vector<2x256xf32>
    %73 = math.exp %72 : vector<2x256xf32>
    %cst_23 = arith.constant 1.000000e+00 : f32
    %74 = vector.broadcast %cst_23 : f32 to vector<2x256xf32>
    %75 = arith.addf %74, %73 : vector<2x256xf32>
    %76 = arith.divf %74, %75 : vector<2x256xf32>
    %77 = vector.extract_strided_slice %76 {offsets = [0, 0], sizes = [2, 128], strides = [1, 1]} : vector<2x256xf32> to vector<2x128xf32>
    %78 = vector.extract_strided_slice %76 {offsets = [0, 128], sizes = [2, 128], strides = [1, 1]} : vector<2x256xf32> to vector<2x128xf32>
    %79 = vector.extract_strided_slice %66 {offsets = [0, 256], sizes = [2, 128], strides = [1, 1]} : vector<2x384xf32> to vector<2x128xf32>
    %80 = vector.extract_strided_slice %68 {offsets = [0, 256], sizes = [2, 128], strides = [1, 1]} : vector<2x384xf32> to vector<2x128xf32>
    %81 = arith.addf %80, %6 : vector<2x128xf32>
    %82 = arith.mulf %77, %81 : vector<2x128xf32>
    %83 = arith.addf %79, %82 : vector<2x128xf32>
    %84 = math.tanh %83 : vector<2x128xf32>
    %85 = arith.subf %59, %84 : vector<2x128xf32>
    %86 = arith.mulf %78, %85 : vector<2x128xf32>
    %87 = arith.addf %84, %86 : vector<2x128xf32>
    %88 = vector.extract_strided_slice %87 {offsets = [0, 0], sizes = [2, 32], strides = [1, 1]} : vector<2x128xf32> to vector<2x32xf32>
    %c0_24 = arith.constant 0 : index
    %c2_25 = arith.constant 2 : index
    %c0_26 = arith.constant 0 : index
    %89 = vector.load %arg5[%c0_24, %c2_25, %c0_26] : memref<2x8x32xf32, #tpu.memory_space<vmem>>, vector<2x1x32xf32>
    %90 = vector.shape_cast %89 : vector<2x1x32xf32> to vector<2x32xf32>
    %91 = vector.shape_cast %88 : vector<2x32xf32> to vector<2x1x32xf32>
    tpu.vector_store %arg5[%c0_24, %c2_25, %c0_26], %91 {strides = array<i32>} : memref<2x8x32xf32, #tpu.memory_space<vmem>>, vector<2x1x32xf32>,
    %c0_27 = arith.constant 0 : index
    %c3 = arith.constant 3 : index
    %c0_28 = arith.constant 0 : index
    %92 = vector.load %arg2[%c0_27, %c3, %c0_28] : memref<2x8x384xbf16, #tpu.memory_space<vmem>>, vector<2x1x384xbf16>
    %93 = vector.shape_cast %92 : vector<2x1x384xbf16> to vector<2x384xbf16>
    %94 = arith.extf %93 : vector<2x384xbf16> to vector<2x384xf32>
    %95 = arith.truncf %87 : vector<2x128xf32> to vector<2x128xbf16>
    %cst_29 = arith.constant dense<0.000000e+00> : vector<2x384xf32>
    %96 = tpu.matmul %95, %3, %cst_29 {dimension_numbers = #tpu.dot_dimension_numbers<[1], [0], [0], [1], [0, 0, 1, 1], [], []>} : vector<2x128xbf16>, vector<128x384xbf16>, vector<2x384xf32> -> vector<2x384xf32>
    %97 = vector.extract_strided_slice %94 {offsets = [0, 0], sizes = [2, 256], strides = [1, 1]} : vector<2x384xf32> to vector<2x256xf32>
    %98 = vector.extract_strided_slice %96 {offsets = [0, 0], sizes = [2, 256], strides = [1, 1]} : vector<2x384xf32> to vector<2x256xf32>
    %99 = arith.addf %97, %98 : vector<2x256xf32>
    %100 = arith.negf %99 : vector<2x256xf32>
    %101 = math.exp %100 : vector<2x256xf32>
    %cst_30 = arith.constant 1.000000e+00 : f32
    %102 = vector.broadcast %cst_30 : f32 to vector<2x256xf32>
    %103 = arith.addf %102, %101 : vector<2x256xf32>
    %104 = arith.divf %102, %103 : vector<2x256xf32>
    %105 = vector.extract_strided_slice %104 {offsets = [0, 0], sizes = [2, 128], strides = [1, 1]} : vector<2x256xf32> to vector<2x128xf32>
    %106 = vector.extract_strided_slice %104 {offsets = [0, 128], sizes = [2, 128], strides = [1, 1]} : vector<2x256xf32> to vector<2x128xf32>
    %107 = vector.extract_strided_slice %94 {offsets = [0, 256], sizes = [2, 128], strides = [1, 1]} : vector<2x384xf32> to vector<2x128xf32>
    %108 = vector.extract_strided_slice %96 {offsets = [0, 256], sizes = [2, 128], strides = [1, 1]} : vector<2x384xf32> to vector<2x128xf32>
    %109 = arith.addf %108, %6 : vector<2x128xf32>
    %110 = arith.mulf %105, %109 : vector<2x128xf32>
    %111 = arith.addf %107, %110 : vector<2x128xf32>
    %112 = math.tanh %111 : vector<2x128xf32>
    %113 = arith.subf %87, %112 : vector<2x128xf32>
    %114 = arith.mulf %106, %113 : vector<2x128xf32>
    %115 = arith.addf %112, %114 : vector<2x128xf32>
    %116 = vector.extract_strided_slice %115 {offsets = [0, 0], sizes = [2, 32], strides = [1, 1]} : vector<2x128xf32> to vector<2x32xf32>
    %c0_31 = arith.constant 0 : index
    %c3_32 = arith.constant 3 : index
    %c0_33 = arith.constant 0 : index
    %117 = vector.load %arg5[%c0_31, %c3_32, %c0_33] : memref<2x8x32xf32, #tpu.memory_space<vmem>>, vector<2x1x32xf32>
    %118 = vector.shape_cast %117 : vector<2x1x32xf32> to vector<2x32xf32>
    %119 = vector.shape_cast %116 : vector<2x32xf32> to vector<2x1x32xf32>
    tpu.vector_store %arg5[%c0_31, %c3_32, %c0_33], %119 {strides = array<i32>} : memref<2x8x32xf32, #tpu.memory_space<vmem>>, vector<2x1x32xf32>,
    %c0_34 = arith.constant 0 : index
    %c4 = arith.constant 4 : index
    %c0_35 = arith.constant 0 : index
    %120 = vector.load %arg2[%c0_34, %c4, %c0_35] : memref<2x8x384xbf16, #tpu.memory_space<vmem>>, vector<2x1x384xbf16>
    %121 = vector.shape_cast %120 : vector<2x1x384xbf16> to vector<2x384xbf16>
    %122 = arith.extf %121 : vector<2x384xbf16> to vector<2x384xf32>
    %123 = arith.truncf %115 : vector<2x128xf32> to vector<2x128xbf16>
    %cst_36 = arith.constant dense<0.000000e+00> : vector<2x384xf32>
    %124 = tpu.matmul %123, %3, %cst_36 {dimension_numbers = #tpu.dot_dimension_numbers<[1], [0], [0], [1], [0, 0, 1, 1], [], []>} : vector<2x128xbf16>, vector<128x384xbf16>, vector<2x384xf32> -> vector<2x384xf32>
    %125 = vector.extract_strided_slice %122 {offsets = [0, 0], sizes = [2, 256], strides = [1, 1]} : vector<2x384xf32> to vector<2x256xf32>
    %126 = vector.extract_strided_slice %124 {offsets = [0, 0], sizes = [2, 256], strides = [1, 1]} : vector<2x384xf32> to vector<2x256xf32>
    %127 = arith.addf %125, %126 : vector<2x256xf32>
    %128 = arith.negf %127 : vector<2x256xf32>
    %129 = math.exp %128 : vector<2x256xf32>
    %cst_37 = arith.constant 1.000000e+00 : f32
    %130 = vector.broadcast %cst_37 : f32 to vector<2x256xf32>
    %131 = arith.addf %130, %129 : vector<2x256xf32>
    %132 = arith.divf %130, %131 : vector<2x256xf32>
    %133 = vector.extract_strided_slice %132 {offsets = [0, 0], sizes = [2, 128], strides = [1, 1]} : vector<2x256xf32> to vector<2x128xf32>
    %134 = vector.extract_strided_slice %132 {offsets = [0, 128], sizes = [2, 128], strides = [1, 1]} : vector<2x256xf32> to vector<2x128xf32>
    %135 = vector.extract_strided_slice %122 {offsets = [0, 256], sizes = [2, 128], strides = [1, 1]} : vector<2x384xf32> to vector<2x128xf32>
    %136 = vector.extract_strided_slice %124 {offsets = [0, 256], sizes = [2, 128], strides = [1, 1]} : vector<2x384xf32> to vector<2x128xf32>
    %137 = arith.addf %136, %6 : vector<2x128xf32>
    %138 = arith.mulf %133, %137 : vector<2x128xf32>
    %139 = arith.addf %135, %138 : vector<2x128xf32>
    %140 = math.tanh %139 : vector<2x128xf32>
    %141 = arith.subf %115, %140 : vector<2x128xf32>
    %142 = arith.mulf %134, %141 : vector<2x128xf32>
    %143 = arith.addf %140, %142 : vector<2x128xf32>
    %144 = vector.extract_strided_slice %143 {offsets = [0, 0], sizes = [2, 32], strides = [1, 1]} : vector<2x128xf32> to vector<2x32xf32>
    %c0_38 = arith.constant 0 : index
    %c4_39 = arith.constant 4 : index
    %c0_40 = arith.constant 0 : index
    %145 = vector.load %arg5[%c0_38, %c4_39, %c0_40] : memref<2x8x32xf32, #tpu.memory_space<vmem>>, vector<2x1x32xf32>
    %146 = vector.shape_cast %145 : vector<2x1x32xf32> to vector<2x32xf32>
    %147 = vector.shape_cast %144 : vector<2x32xf32> to vector<2x1x32xf32>
    tpu.vector_store %arg5[%c0_38, %c4_39, %c0_40], %147 {strides = array<i32>} : memref<2x8x32xf32, #tpu.memory_space<vmem>>, vector<2x1x32xf32>,
    %c0_41 = arith.constant 0 : index
    %c5 = arith.constant 5 : index
    %c0_42 = arith.constant 0 : index
    %148 = vector.load %arg2[%c0_41, %c5, %c0_42] : memref<2x8x384xbf16, #tpu.memory_space<vmem>>, vector<2x1x384xbf16>
    %149 = vector.shape_cast %148 : vector<2x1x384xbf16> to vector<2x384xbf16>
    %150 = arith.extf %149 : vector<2x384xbf16> to vector<2x384xf32>
    %151 = arith.truncf %143 : vector<2x128xf32> to vector<2x128xbf16>
    %cst_43 = arith.constant dense<0.000000e+00> : vector<2x384xf32>
    %152 = tpu.matmul %151, %3, %cst_43 {dimension_numbers = #tpu.dot_dimension_numbers<[1], [0], [0], [1], [0, 0, 1, 1], [], []>} : vector<2x128xbf16>, vector<128x384xbf16>, vector<2x384xf32> -> vector<2x384xf32>
    %153 = vector.extract_strided_slice %150 {offsets = [0, 0], sizes = [2, 256], strides = [1, 1]} : vector<2x384xf32> to vector<2x256xf32>
    %154 = vector.extract_strided_slice %152 {offsets = [0, 0], sizes = [2, 256], strides = [1, 1]} : vector<2x384xf32> to vector<2x256xf32>
    %155 = arith.addf %153, %154 : vector<2x256xf32>
    %156 = arith.negf %155 : vector<2x256xf32>
    %157 = math.exp %156 : vector<2x256xf32>
    %cst_44 = arith.constant 1.000000e+00 : f32
    %158 = vector.broadcast %cst_44 : f32 to vector<2x256xf32>
    %159 = arith.addf %158, %157 : vector<2x256xf32>
    %160 = arith.divf %158, %159 : vector<2x256xf32>
    %161 = vector.extract_strided_slice %160 {offsets = [0, 0], sizes = [2, 128], strides = [1, 1]} : vector<2x256xf32> to vector<2x128xf32>
    %162 = vector.extract_strided_slice %160 {offsets = [0, 128], sizes = [2, 128], strides = [1, 1]} : vector<2x256xf32> to vector<2x128xf32>
    %163 = vector.extract_strided_slice %150 {offsets = [0, 256], sizes = [2, 128], strides = [1, 1]} : vector<2x384xf32> to vector<2x128xf32>
    %164 = vector.extract_strided_slice %152 {offsets = [0, 256], sizes = [2, 128], strides = [1, 1]} : vector<2x384xf32> to vector<2x128xf32>
    %165 = arith.addf %164, %6 : vector<2x128xf32>
    %166 = arith.mulf %161, %165 : vector<2x128xf32>
    %167 = arith.addf %163, %166 : vector<2x128xf32>
    %168 = math.tanh %167 : vector<2x128xf32>
    %169 = arith.subf %143, %168 : vector<2x128xf32>
    %170 = arith.mulf %162, %169 : vector<2x128xf32>
    %171 = arith.addf %168, %170 : vector<2x128xf32>
    %172 = vector.extract_strided_slice %171 {offsets = [0, 0], sizes = [2, 32], strides = [1, 1]} : vector<2x128xf32> to vector<2x32xf32>
    %c0_45 = arith.constant 0 : index
    %c5_46 = arith.constant 5 : index
    %c0_47 = arith.constant 0 : index
    %173 = vector.load %arg5[%c0_45, %c5_46, %c0_47] : memref<2x8x32xf32, #tpu.memory_space<vmem>>, vector<2x1x32xf32>
    %174 = vector.shape_cast %173 : vector<2x1x32xf32> to vector<2x32xf32>
    %175 = vector.shape_cast %172 : vector<2x32xf32> to vector<2x1x32xf32>
    tpu.vector_store %arg5[%c0_45, %c5_46, %c0_47], %175 {strides = array<i32>} : memref<2x8x32xf32, #tpu.memory_space<vmem>>, vector<2x1x32xf32>,
    %c0_48 = arith.constant 0 : index
    %c6 = arith.constant 6 : index
    %c0_49 = arith.constant 0 : index
    %176 = vector.load %arg2[%c0_48, %c6, %c0_49] : memref<2x8x384xbf16, #tpu.memory_space<vmem>>, vector<2x1x384xbf16>
    %177 = vector.shape_cast %176 : vector<2x1x384xbf16> to vector<2x384xbf16>
    %178 = arith.extf %177 : vector<2x384xbf16> to vector<2x384xf32>
    %179 = arith.truncf %171 : vector<2x128xf32> to vector<2x128xbf16>
    %cst_50 = arith.constant dense<0.000000e+00> : vector<2x384xf32>
    %180 = tpu.matmul %179, %3, %cst_50 {dimension_numbers = #tpu.dot_dimension_numbers<[1], [0], [0], [1], [0, 0, 1, 1], [], []>} : vector<2x128xbf16>, vector<128x384xbf16>, vector<2x384xf32> -> vector<2x384xf32>
    %181 = vector.extract_strided_slice %178 {offsets = [0, 0], sizes = [2, 256], strides = [1, 1]} : vector<2x384xf32> to vector<2x256xf32>
    %182 = vector.extract_strided_slice %180 {offsets = [0, 0], sizes = [2, 256], strides = [1, 1]} : vector<2x384xf32> to vector<2x256xf32>
    %183 = arith.addf %181, %182 : vector<2x256xf32>
    %184 = arith.negf %183 : vector<2x256xf32>
    %185 = math.exp %184 : vector<2x256xf32>
    %cst_51 = arith.constant 1.000000e+00 : f32
    %186 = vector.broadcast %cst_51 : f32 to vector<2x256xf32>
    %187 = arith.addf %186, %185 : vector<2x256xf32>
    %188 = arith.divf %186, %187 : vector<2x256xf32>
    %189 = vector.extract_strided_slice %188 {offsets = [0, 0], sizes = [2, 128], strides = [1, 1]} : vector<2x256xf32> to vector<2x128xf32>
    %190 = vector.extract_strided_slice %188 {offsets = [0, 128], sizes = [2, 128], strides = [1, 1]} : vector<2x256xf32> to vector<2x128xf32>
    %191 = vector.extract_strided_slice %178 {offsets = [0, 256], sizes = [2, 128], strides = [1, 1]} : vector<2x384xf32> to vector<2x128xf32>
    %192 = vector.extract_strided_slice %180 {offsets = [0, 256], sizes = [2, 128], strides = [1, 1]} : vector<2x384xf32> to vector<2x128xf32>
    %193 = arith.addf %192, %6 : vector<2x128xf32>
    %194 = arith.mulf %189, %193 : vector<2x128xf32>
    %195 = arith.addf %191, %194 : vector<2x128xf32>
    %196 = math.tanh %195 : vector<2x128xf32>
    %197 = arith.subf %171, %196 : vector<2x128xf32>
    %198 = arith.mulf %190, %197 : vector<2x128xf32>
    %199 = arith.addf %196, %198 : vector<2x128xf32>
    %200 = vector.extract_strided_slice %199 {offsets = [0, 0], sizes = [2, 32], strides = [1, 1]} : vector<2x128xf32> to vector<2x32xf32>
    %c0_52 = arith.constant 0 : index
    %c6_53 = arith.constant 6 : index
    %c0_54 = arith.constant 0 : index
    %201 = vector.load %arg5[%c0_52, %c6_53, %c0_54] : memref<2x8x32xf32, #tpu.memory_space<vmem>>, vector<2x1x32xf32>
    %202 = vector.shape_cast %201 : vector<2x1x32xf32> to vector<2x32xf32>
    %203 = vector.shape_cast %200 : vector<2x32xf32> to vector<2x1x32xf32>
    tpu.vector_store %arg5[%c0_52, %c6_53, %c0_54], %203 {strides = array<i32>} : memref<2x8x32xf32, #tpu.memory_space<vmem>>, vector<2x1x32xf32>,
    %c0_55 = arith.constant 0 : index
    %c7 = arith.constant 7 : index
    %c0_56 = arith.constant 0 : index
    %204 = vector.load %arg2[%c0_55, %c7, %c0_56] : memref<2x8x384xbf16, #tpu.memory_space<vmem>>, vector<2x1x384xbf16>
    %205 = vector.shape_cast %204 : vector<2x1x384xbf16> to vector<2x384xbf16>
    %206 = arith.extf %205 : vector<2x384xbf16> to vector<2x384xf32>
    %207 = arith.truncf %199 : vector<2x128xf32> to vector<2x128xbf16>
    %cst_57 = arith.constant dense<0.000000e+00> : vector<2x384xf32>
    %208 = tpu.matmul %207, %3, %cst_57 {dimension_numbers = #tpu.dot_dimension_numbers<[1], [0], [0], [1], [0, 0, 1, 1], [], []>} : vector<2x128xbf16>, vector<128x384xbf16>, vector<2x384xf32> -> vector<2x384xf32>
    %209 = vector.extract_strided_slice %206 {offsets = [0, 0], sizes = [2, 256], strides = [1, 1]} : vector<2x384xf32> to vector<2x256xf32>
    %210 = vector.extract_strided_slice %208 {offsets = [0, 0], sizes = [2, 256], strides = [1, 1]} : vector<2x384xf32> to vector<2x256xf32>
    %211 = arith.addf %209, %210 : vector<2x256xf32>
    %212 = arith.negf %211 : vector<2x256xf32>
    %213 = math.exp %212 : vector<2x256xf32>
    %cst_58 = arith.constant 1.000000e+00 : f32
    %214 = vector.broadcast %cst_58 : f32 to vector<2x256xf32>
    %215 = arith.addf %214, %213 : vector<2x256xf32>
    %216 = arith.divf %214, %215 : vector<2x256xf32>
    %217 = vector.extract_strided_slice %216 {offsets = [0, 0], sizes = [2, 128], strides = [1, 1]} : vector<2x256xf32> to vector<2x128xf32>
    %218 = vector.extract_strided_slice %216 {offsets = [0, 128], sizes = [2, 128], strides = [1, 1]} : vector<2x256xf32> to vector<2x128xf32>
    %219 = vector.extract_strided_slice %206 {offsets = [0, 256], sizes = [2, 128], strides = [1, 1]} : vector<2x384xf32> to vector<2x128xf32>
    %220 = vector.extract_strided_slice %208 {offsets = [0, 256], sizes = [2, 128], strides = [1, 1]} : vector<2x384xf32> to vector<2x128xf32>
    %221 = arith.addf %220, %6 : vector<2x128xf32>
    %222 = arith.mulf %217, %221 : vector<2x128xf32>
    %223 = arith.addf %219, %222 : vector<2x128xf32>
    %224 = math.tanh %223 : vector<2x128xf32>
    %225 = arith.subf %199, %224 : vector<2x128xf32>
    %226 = arith.mulf %218, %225 : vector<2x128xf32>
    %227 = arith.addf %224, %226 : vector<2x128xf32>
    %228 = vector.extract_strided_slice %227 {offsets = [0, 0], sizes = [2, 32], strides = [1, 1]} : vector<2x128xf32> to vector<2x32xf32>
    %c0_59 = arith.constant 0 : index
    %c7_60 = arith.constant 7 : index
    %c0_61 = arith.constant 0 : index
    %229 = vector.load %arg5[%c0_59, %c7_60, %c0_61] : memref<2x8x32xf32, #tpu.memory_space<vmem>>, vector<2x1x32xf32>
    %230 = vector.shape_cast %229 : vector<2x1x32xf32> to vector<2x32xf32>
    %231 = vector.shape_cast %228 : vector<2x32xf32> to vector<2x1x32xf32>
    tpu.vector_store %arg5[%c0_59, %c7_60, %c0_61], %231 {strides = array<i32>} : memref<2x8x32xf32, #tpu.memory_space<vmem>>, vector<2x1x32xf32>,
    %c0_62 = arith.constant 0 : index
    %c0_63 = arith.constant 0 : index
    %232 = vector.load %arg6[%c0_62, %c0_63] : memref<2x128xf32, #tpu.memory_space<vmem>>, vector<2x128xf32>
    tpu.vector_store %arg6[%c0_62, %c0_63], %227 {strides = array<i32>} : memref<2x128xf32, #tpu.memory_space<vmem>>, vector<2x128xf32>,
    return
  }
  func.func @transform_0(%arg0: i32, %arg1: i32) -> (i32, i32, i32) {
    %c0_i32 = arith.constant 0 : i32
    %c0_i32_0 = arith.constant 0 : i32
    return %arg0, %arg1, %c0_i32 : i32, i32, i32
  }
  func.func @transform_1(%arg0: i32, %arg1: i32) -> (i32, i32) {
    %c0_i32 = arith.constant 0 : i32
    %c0_i32_0 = arith.constant 0 : i32
    %c0_i32_1 = arith.constant 0 : i32
    return %c0_i32, %c0_i32_0 : i32, i32
  }
  func.func @transform_2(%arg0: i32, %arg1: i32) -> (i32, i32) {
    %c0_i32 = arith.constant 0 : i32
    %c0_i32_0 = arith.constant 0 : i32
    %c0_i32_1 = arith.constant 0 : i32
    return %c0_i32, %c0_i32_0 : i32, i32
  }
  func.func @transform_3(%arg0: i32, %arg1: i32) -> (i32, i32, i32) {
    %c0_i32 = arith.constant 0 : i32
    %c0_i32_0 = arith.constant 0 : i32
    return %arg0, %arg1, %c0_i32 : i32, i32, i32
  }
}

</mosaic_0001>

<bundles_post_ra>
// kernel: source_encoder_forward.2
= control target key start
LH: loop header
LB: loop body
LE: loop exit
PB: predicated region body
PF: predicated region fallthrough
CT: control target
= control target key end

     0   :  { %v764_v1 = vmov 0   ;;  %vm88_vm0 = vcmask 523264   ;;  %v33_v58 = vlaneseq  ;;  %s984_s1 = inlined_call_operand.vmem [shape: bf16[64,256], index: 1, kind: input, shape index: {}]   ;;  %s985_s0 = inlined_call_operand.vmem [shape: bf16[16,64], index: 0, kind: input, shape index: {}]   ;;  %s986_s3 = inlined_call_operand.vmem [shape: bf16[256,384], index: 3, kind: input, shape index: {}]   ;;  %s987_s2 = inlined_call_operand.vmem [shape: f32[1,256], index: 2, kind: input, shape index: {}]   ;;  %s988_s4 = inlined_call_operand.vmem [shape: f32[1,384], index: 4, kind: input, shape index: {}]   ;;  %s989_s5 = inlined_call_operand.vmem [shape: bf16[16,384], index: 5, kind: output, shape index: {}]  }
   0x1   :  { %v679_v0 = vld [vmem:[%s984_s1 + $0x4] ss:$8 sps:$4 sm:$0xff]   ;;  %124 = vmatprep.mubr.bf16.mxu0 %v764_v1  ;;  %v681_v2 = vld [vmem:[%s984_s1] ss:$8 sps:$4 sm:$0xff]   ;;  %v682_v3 = vld [vmem:[%s984_s1 + $0x14] ss:$8 sps:$4 sm:$0xff]  }
   0x2   :  { %92 = vmatprep.subr.bf16.mxu0 %v679_v0  ;;  %v684_v4 = vld [vmem:[%s984_s1 + $0x10] ss:$8 sps:$4 sm:$0xff]   ;;  %v685_v5 = vld [vmem:[%s984_s1 + $0x24] ss:$8 sps:$4 sm:$0xff]   ;;  %v687_v6 = vld [vmem:[%s984_s1 + $0x20] ss:$8 sps:$4 sm:$0xff]  }
   0x3   :  { %93 = vmatpush1.bf16.msra.mxu0 %v681_v2  ;;  %v692_v7 = vld [vmem:[%s986_s3 + $0x4] ss:$12 sps:$4 sm:$0xff]   ;;  %v694_v8 = vld [vmem:[%s986_s3] ss:$12 sps:$4 sm:$0xff]   ;;  %v688_v9 = vld [vmem:[%s984_s1 + $0x34] ss:$8 sps:$4 sm:$0xff]  }
   0x4   :  { %94 = vmatprep.subr.bf16.mxu0 %v682_v3  ;;  %v695_v10 = vld [vmem:[%s986_s3 + $0x1c] ss:$12 sps:$4 sm:$0xff]   ;;  %478 = vmatprep.subr.bf16.mxu1 %v692_v7  ;;  %v697_v11 = vld [vmem:[%s986_s3 + $0x18] ss:$12 sps:$4 sm:$0xff]   ;;  %v698_v13 = vld [vmem:[%s986_s3 + $0x34] ss:$12 sps:$4 sm:$0xff]  }
   0x5   :  { %479 = vmatpush1.bf16.msra.mxu1 %v694_v8  ;;  %v690_v12 = vld [vmem:[%s984_s1 + $0x30] ss:$8 sps:$4 sm:$0xff]   ;;  %v691_v14 = vld [vmem:[%s985_s0] sm:$0xff]   ;;  %v703_v17 = vld [vmem:[%s986_s3 + $0x48] ss:$12 sps:$4 sm:$0xff]   ;;  %v34_v59 = vshrl.u32 %v33_v58, 7 }
   0x6   :  { %480 = vmatprep.subr.bf16.mxu1 %v695_v10  ;;  %v700_v15 = vld [vmem:[%s986_s3 + $0x30] ss:$12 sps:$4 sm:$0xff]   ;;  %v701_v16 = vld [vmem:[%s986_s3 + $0x4c] ss:$12 sps:$4 sm:$0xff]   ;;  %v718_v18 = vld [vmem:[%s986_s3 + $0xc8] ss:$12 sps:$4 sm:$0xff]  }
   0x7   :  { %95 = vmatpush1.bf16.msra.mxu0 %v684_v4  ;;  %v704_v19 = vld [vmem:[%s986_s3 + $0x64] ss:$12 sps:$4 sm:$0xff]   ;;  %v720_v20 = vld [vmem:[%s986_s3 + $0x8] ss:$12 sps:$4 sm:$0xff]   ;;  %v706_v21 = vld [vmem:[%s986_s3 + $0x60] ss:$12 sps:$4 sm:$0xff]  }
   0x8   :  { %96 = vmatprep.subr.bf16.mxu0 %v685_v5  ;;  %v707_v22 = vld [vmem:[%s986_s3 + $0x7c] ss:$12 sps:$4 sm:$0xff]   ;;  %v723_v23 = vld [vmem:[%s986_s3 + $0xe0] ss:$12 sps:$4 sm:$0xff]   ;;  %v709_v25 = vld [vmem:[%s986_s3 + $0x78] ss:$12 sps:$4 sm:$0xff]  }
   0x9   :  { %481 = vmatpush1.bf16.msra.mxu1 %v697_v11  ;;  %v725_v24 = vld [vmem:[%s986_s3 + $0x20] ss:$12 sps:$4 sm:$0xff]   ;;  %v728_v26 = vld [vmem:[%s986_s3 + $0xf8] ss:$12 sps:$4 sm:$0xff]   ;;  %v712_v29 = vld [vmem:[%s986_s3 + $0x90] ss:$12 sps:$4 sm:$0xff]  }
   0xa   :  { %482 = vmatprep.subr.bf16.mxu1 %v698_v13  ;;  %v730_v27 = vld [vmem:[%s986_s3 + $0x38] ss:$12 sps:$4 sm:$0xff]   ;;  %v710_v28 = vld [vmem:[%s986_s3 + $0x94] ss:$12 sps:$4 sm:$0xff]   ;;  %v721_v34 = vld [vmem:[%s986_s3 + $0xdc] ss:$12 sps:$4 sm:$0xff]  }
   0xb   :  { %97 = vmatpush1.bf16.msra.mxu0 %v687_v6  ;;  %v713_v30 = vld [vmem:[%s986_s3 + $0xac] ss:$12 sps:$4 sm:$0xff]   ;;  %v715_v31 = vld [vmem:[%s986_s3 + $0xa8] ss:$12 sps:$4 sm:$0xff]   ;;  %v716_v32 = vld [vmem:[%s986_s3 + $0xc4] ss:$12 sps:$4 sm:$0xff]  }
   0xc   :  { %98 = vmatprep.subr.bf16.mxu0 %v688_v9  ;;  %v719_v33 = vld [vmem:[%s986_s3 + $0xc0] ss:$12 sps:$4 sm:$0xff]   ;;  %v724_v35 = vld [vmem:[%s986_s3 + $0xd8] ss:$12 sps:$4 sm:$0xff]   ;;  %v729_v37 = vld [vmem:[%s986_s3 + $0xf0] ss:$12 sps:$4 sm:$0xff]  }
   0xd   :  { %483 = vmatpush1.bf16.msra.mxu1 %v700_v15  ;;  %v726_v36 = vld [vmem:[%s986_s3 + $0xf4] ss:$12 sps:$4 sm:$0xff]   ;;  %v731_v38 = vld [vmem:[%s986_s3 + $0x10c] ss:$12 sps:$4 sm:$0xff]   ;;  %v733_v39 = vld [vmem:[%s986_s3 + $0x110] ss:$12 sps:$4 sm:$0xff]  }
   0xe   :  { %484 = vmatprep.subr.bf16.mxu1 %v701_v16  ;;  %v734_v40 = vld [vmem:[%s986_s3 + $0x108] ss:$12 sps:$4 sm:$0xff]   ;;  %v735_v41 = vld [vmem:[%s986_s3 + $0x50] ss:$12 sps:$4 sm:$0xff]   ;;  %v739_v44 = vld [vmem:[%s986_s3 + $0x120] ss:$12 sps:$4 sm:$0xff]  }
   0xf   :  { %99 = vmatpush1.bf16.msra.mxu0 %v690_v12  ;;  %v736_v42 = vld [vmem:[%s986_s3 + $0x124] ss:$12 sps:$4 sm:$0xff]   ;;  %v738_v43 = vld [vmem:[%s986_s3 + $0x128] ss:$12 sps:$4 sm:$0xff]   ;;  %v743_v47 = vld [vmem:[%s986_s3 + $0x140] ss:$12 sps:$4 sm:$0xff]  }
  0x10   :  { %656 = vmatprep.subr.bf16.mxu0 %v718_v18  ;;  %v740_v45 = vld [vmem:[%s986_s3 + $0x68] ss:$12 sps:$4 sm:$0xff]   ;;  %v744_v48 = vld [vmem:[%s986_s3 + $0x138] ss:$12 sps:$4 sm:$0xff]   ;;  %v745_v49 = vld [vmem:[%s986_s3 + $0x80] ss:$12 sps:$4 sm:$0xff]  }
  0x11   :  { %485 = vmatpush1.bf16.msra.mxu1 %v703_v17  ;;  %v741_v46 = vld [vmem:[%s986_s3 + $0x13c] ss:$12 sps:$4 sm:$0xff]   ;;  %v746_v50 = vld [vmem:[%s986_s3 + $0x154] ss:$12 sps:$4 sm:$0xff]   ;;  %v748_v51 = vld [vmem:[%s986_s3 + $0x158] ss:$12 sps:$4 sm:$0xff]  }
  0x12   :  { %599 = vmatmul.mubr.msk.bf16.vlgmr.msra.gmra.mrb[0].mxu0 %vm88_vm0, %v691_v14  ;;  %486 = vmatprep.subr.bf16.mxu1 %v704_v19  ;;  %v749_v52 = vld [vmem:[%s986_s3 + $0x150] ss:$12 sps:$4 sm:$0xff]   ;;  %v750_v53 = vld [vmem:[%s986_s3 + $0x98] ss:$12 sps:$4 sm:$0xff]   ;;  %v754_v56 = vld [vmem:[%s986_s3 + $0x168] ss:$12 sps:$4 sm:$0xff]  }
  0x13   :  { %657 = vmatpush3.bf16.msra.mxu0 %v720_v20  ;;  %v751_v54 = vld [vmem:[%s986_s3 + $0x16c] ss:$12 sps:$4 sm:$0xff]   ;;  %v753_v55 = vld [vmem:[%s986_s3 + $0x170] ss:$12 sps:$4 sm:$0xff]   ;;  %v35_v60 = vsub.s32 0, %v34_v59  ;;  %v39_v62 = vsub.s32 1, %v34_v59 }
  0x14   :  { %658 = vmatprep.subr.bf16.mxu0 %v723_v23  ;;  %v755_v57 = vld [vmem:[%s986_s3 + $0xb0] ss:$12 sps:$4 sm:$0xff]   ;;  %v31_v61 = vld [vmem:[%s987_s2] sm:$0x3]  ;;  %v217_v16 = vsub.s32 2, %v34_v59 }
  0x15   :  { %487 = vmatpush1.bf16.msra.mxu1 %v706_v21  ;;  %v36_v63 = vrot.slane %v31_v61, %v35_v60  ;;  %v40_v0 = vrot.slane %v31_v61, %v39_v62  ;;  %v205_v15 = vld [vmem:[%s988_s4] sm:$0x7] }
  0x16   :  { %488 = vmatprep.subr.bf16.mxu1 %v707_v22  ;;  %v210_v17 = vrot.slane %v205_v15, %v35_v60  ;;  %v214_v18 = vrot.slane %v205_v15, %v39_v62  ;;  %v218_v21 = vrot.slane %v205_v15, %v217_v16 }
  0x17   :  { %659 = vmatpush3.bf16.msra.mxu0 %v725_v24 }
  0x18   :  { %660 = vmatprep.subr.bf16.mxu0 %v728_v26 }
  0x19   :  { %489 = vmatpush1.bf16.msra.mxu1 %v709_v25 }
  0x1a   :  { %490 = vmatprep.subr.bf16.mxu1 %v710_v28 }
  0x1b   :  { %661 = vmatpush3.bf16.msra.mxu0 %v730_v27 }
  0x1c   :  { %662 = vmatprep.subr.bf16.mxu0 %v733_v39 }
  0x1d   :  { %491 = vmatpush1.bf16.msra.mxu1 %v712_v29 }
  0x1e   :  { %492 = vmatprep.subr.bf16.mxu1 %v713_v30 }
  0x1f   :  { %663 = vmatpush3.bf16.msra.mxu0 %v735_v41 }
  0x20   :  { %664 = vmatprep.subr.bf16.mxu0 %v738_v43 }
  0x21   :  { %493 = vmatpush1.bf16.msra.mxu1 %v715_v31 }
  0x22   :  { %494 = vmatprep.subr.bf16.mxu1 %v716_v32 }
  0x23   :  { %665 = vmatpush3.bf16.msra.mxu0 %v740_v45 }
  0x24   :  { %666 = vmatprep.subr.bf16.mxu0 %v743_v47 }
  0x25   :  { %495 = vmatpush1.bf16.msra.mxu1 %v719_v33 }
  0x26   :  { %496 = vmatprep.subr.bf16.mxu1 %v721_v34 }
  0x27   :  { %667 = vmatpush3.bf16.msra.mxu0 %v745_v49 }
  0x28   :  { %668 = vmatprep.subr.bf16.mxu0 %v748_v51 }
  0x29   :  { %497 = vmatpush1.bf16.msra.mxu1 %v724_v35 }
  0x2a   :  { %498 = vmatprep.subr.bf16.mxu1 %v726_v36 }
  0x2b   :  { %669 = vmatpush3.bf16.msra.mxu0 %v750_v53 }
  0x2c   :  { %670 = vmatprep.subr.bf16.mxu0 %v753_v55 }
  0x2d   :  { %499 = vmatpush1.bf16.msra.mxu1 %v729_v37 }
  0x2e   :  { %500 = vmatprep.subr.bf16.mxu1 %v731_v38 }
  0x2f   :  { %671 = vmatpush3.bf16.msra.mxu0 %v755_v57 }
  0x31   :  { %501 = vmatpush1.bf16.msra.mxu1 %v734_v40 }
  0x32   :  { %502 = vmatprep.subr.bf16.mxu1 %v736_v42 }
  0x35   :  { %503 = vmatpush1.bf16.msra.mxu1 %v739_v44 }
  0x36   :  { %504 = vmatprep.subr.bf16.mxu1 %v741_v46 }
  0x39   :  { %505 = vmatpush1.bf16.msra.mxu1 %v744_v48 }
  0x3a   :  { %506 = vmatprep.subr.bf16.mxu1 %v746_v50 }
  0x3d   :  { %507 = vmatpush1.bf16.msra.mxu1 %v749_v52 }
  0x3e   :  { %508 = vmatprep.subr.bf16.mxu1 %v751_v54 }
  0x41   :  { %509 = vmatpush1.bf16.msra.mxu1 %v754_v56 }
  0xe5   :  { %v126_v1 = vpop.f32.mrb[0].mxu0 }
  0xe6   :  { %v127_v2 = vadd.f32 %v126_v1, %v36_v63  ;;  %v128_v3 = vpop.f32.mrb[1].mxu0 }
  0xe7   :  { %v129_v4 = vadd.f32 %v128_v3, %v40_v0  ;;  %v130_v5 = vpop.f32.mrb[2].mxu0 }
  0xe8   :  { %756 = vtanh.f32 %v127_v2  ;;  %v131_v6 = vadd.f32 %v130_v5, %v36_v63  ;;  %v132_v7 = vpop.f32.mrb[3].mxu0 }
  0xe9   :  { %758 = vtanh.f32 %v129_v4  ;;  %v133_v8 = vadd.f32 %v132_v7, %v40_v0 }
  0xea   :  { %760 = vtanh.f32 %v131_v6 }
  0xeb   :  { %762 = vtanh.f32 %v133_v8 }
  0xf2   :  { %v757_v9 = vpop.eup %756 }
  0xf3   :  { %v759_v10 = vpop.eup %758 }
  0xf4   :  { %v761_v11 = vpop.eup %760 }
  0xf5   :  { %v763_v12 = vpop.eup %762  ;;  %v139_v13 = vpack.c.bf16 %v761_v11, %v757_v9 }
  0xf6   :  { %v140_v14 = vpack.c.bf16 %v763_v12, %v759_v10 }
  0xf8   :  { %510 = vmatprep.mubr.bf16.mxu1 %v140_v14  ;;  %553 = vmatprep.mubr.bf16.mxu0 %v140_v14 }
  0xf9   :  { %511 = vmatmul.mubr.bf16.vlgmr.msra.gmra.mrb[0].mxu1 %v139_v13  ;;  %554 = vmatmul.mubr.bf16.vlgmr.msra.gmra.mrb[4].mxu0 %v139_v13 }
 0x1cc   :  { %v512_v19 = vpop.f32.mrb[0].mxu1  ;;  %v672_v20 = vpop.f32.mrb[4].mxu0 }
 0x1cd   :  { %v513_v22 = vadd.f32 %v512_v19, %v210_v17  ;;  %v514_v23 = vpop.f32.mrb[1].mxu1  ;;  %v673_v24 = vpop.f32.mrb[5].mxu0 }
 0x1ce   :  { %v515_v25 = vadd.f32 %v514_v23, %v214_v18  ;;  %v674_v26 = vadd.f32 %v673_v24, %v672_v20  ;;  %v516_v27 = vpop.f32.mrb[2].mxu1  ;;  %v675_v28 = vpop.f32.mrb[6].mxu0 }
 0x1cf   :  { %v517_v29 = vadd.f32 %v516_v27, %v210_v17  ;;  %v518_v30 = vpop.f32.mrb[3].mxu1  ;;  %v676_v31 = vpop.f32.mrb[7].mxu0 }
 0x1d0   :  { %v652_v32 = vpack.c.bf16 %v515_v25, %v513_v22  ;;  %v556_v33 = vadd.f32 %v674_v26, %v218_v21  ;;  %v519_v34 = vadd.f32 %v518_v30, %v214_v18  ;;  %v677_v35 = vadd.f32 %v676_v31, %v675_v28 }
 0x1d2   :  { %582 = vst [vmem:[%s989_s5] sm:$0xff] %v652_v32  ;;  %v653_v36 = vpack.c.bf16 %v556_v33, %v556_v33  ;;  %v654_v37 = vpack.c.bf16 %v519_v34, %v517_v29  ;;  %v559_v38 = vadd.f32 %v677_v35, %v218_v21 }
 0x1d4   :  { %583 = vst [vmem:[%s989_s5 + $0x8] sm:$0xf] %v653_v36  ;;  %584 = vst [vmem:[%s989_s5 + $0xc] sm:$0xff] %v654_v37  ;;  %v655_v39 = vpack.c.bf16 %v559_v38, %v559_v38 }
 0x1d6   :  { %585 = vst [vmem:[%s989_s5 + $0x14] sm:$0xf] %v655_v39 }

// kernel: source_encoder_forward.3
= control target key start
LH: loop header
LB: loop body
LE: loop exit
PB: predicated region body
PF: predicated region fallthrough
CT: control target
= control target key end

     0   :  { %v2111_v2 = vmov 0.0   ;;  %v2112_v3 = vmov 0   ;;  %vm2113_vm0 = vmmov 0   ;;  %s2881_s0 = inlined_call_operand.vmem [shape: bf16[2,8,384], index: 0, kind: input, shape index: {}]   ;;  %s2882_s1 = inlined_call_operand.vmem [shape: bf16[128,384], index: 1, kind: input, shape index: {}]   ;;  %s2883_s2 = inlined_call_operand.vmem [shape: f32[1,128], index: 2, kind: input, shape index: {}]   ;;  %s2884_s3 = inlined_call_operand.hbm [shape: f32[2,8,32], index: 3, kind: output, shape index: {}]  }
   0x1   :  { %v2140_v0 = vld [vmem:[%s2882_s1 + $0x4] ss:$12 sps:$4 sm:$0xff]   ;;  %v2145_v1 = vld [vmem:[%s2882_s1] ss:$12 sps:$4 sm:$0xff]   ;;  %1704 = vmatprep.subr.bf16.mxu1 %v2111_v2  ;;  %20 = vst [vmem:[#allocation2] sm:$0x3] %v2111_v2  ;;  %232 = vmatprep.mubr.bf16.mxu0 %v2112_v3 }
   0x2   :  { %200 = vmatprep.subr.bf16.mxu0 %v2140_v0  ;;  %v2154_v4 = vld [vmem:[%s2882_s1 + $0x1c] ss:$12 sps:$4 sm:$0xff]   ;;  %1720 = vmatprep.mubr.msk.bf16.mxu1 %vm2113_vm0, %v2111_v2  ;;  %v2162_v5 = vld [vmem:[%s2882_s1 + $0x18] ss:$12 sps:$4 sm:$0xff]   ;;  %v2168_v6 = vld [vmem:[%s2882_s1 + $0x34] ss:$12 sps:$4 sm:$0xff]  }
   0x3   :  { %201 = vmatpush1.bf16.msra.mxu0 %v2145_v1  ;;  %v2174_v7 = vld [vmem:[%s2882_s1 + $0x30] ss:$12 sps:$4 sm:$0xff]   ;;  %v2180_v8 = vld [vmem:[%s2882_s1 + $0x4c] ss:$12 sps:$4 sm:$0xff]   ;;  %v2185_v9 = vld [vmem:[%s2882_s1 + $0x8] ss:$12 sps:$4 sm:$0xff]  }
   0x4   :  { %202 = vmatprep.subr.bf16.mxu0 %v2154_v4  ;;  %v2191_v10 = vld [vmem:[%s2882_s1 + $0x48] ss:$12 sps:$4 sm:$0xff]   ;;  %1705 = vmatpush3.bf16.msra.mxu1 %v2185_v9  ;;  %v2198_v11 = vld [vmem:[%s2882_s1 + $0x64] ss:$12 sps:$4 sm:$0xff]   ;;  %v2204_v12 = vld [vmem:[%s2882_s1 + $0x20] ss:$12 sps:$4 sm:$0xff]  }
   0x5   :  { %1706 = vmatprep.subr.bf16.mxu1 %v2111_v2  ;;  %v2209_v13 = vld [vmem:[%s2882_s1 + $0x60] ss:$12 sps:$4 sm:$0xff]   ;;  %v2216_v14 = vld [vmem:[%s2882_s1 + $0x38] ss:$12 sps:$4 sm:$0xff]   ;;  %v2222_v15 = vld [vmem:[%s2882_s1 + $0x7c] ss:$12 sps:$4 sm:$0xff]  }
   0x6   :  { %v2229_v16 = vld [vmem:[%s2882_s1 + $0x78] ss:$12 sps:$4 sm:$0xff]   ;;  %v2235_v17 = vld [vmem:[%s2882_s1 + $0x50] ss:$12 sps:$4 sm:$0xff]  }
   0x7   :  { %203 = vmatpush1.bf16.msra.mxu0 %v2162_v5 }
   0x8   :  { %204 = vmatprep.subr.bf16.mxu0 %v2168_v6  ;;  %1707 = vmatpush3.bf16.msra.mxu1 %v2204_v12 }
   0x9   :  { %1708 = vmatprep.subr.bf16.mxu1 %v2111_v2 }
   0xb   :  { %205 = vmatpush1.bf16.msra.mxu0 %v2174_v7 }
   0xc   :  { %206 = vmatprep.subr.bf16.mxu0 %v2180_v8  ;;  %1709 = vmatpush3.bf16.msra.mxu1 %v2216_v14 }
   0xf   :  { %207 = vmatpush1.bf16.msra.mxu0 %v2191_v10 }
  0x10   :  { %208 = vmatprep.subr.bf16.mxu0 %v2198_v11 }
  0x13   :  { %209 = vmatpush1.bf16.msra.mxu0 %v2209_v13 }
  0x14   :  { %8 = vsyncpa [#allocation4], 0  ;;  %210 = vmatprep.subr.bf16.mxu0 %v2222_v15  ;;  %v2241_v18 = vld [vmem:[%s2882_s1 + $0x94] ss:$12 sps:$4 sm:$0xff]   ;;  %1710 = vmatprep.subr.bf16.mxu1 %v2111_v2  ;;  %v2248_v19 = vld [vmem:[%s2882_s1 + $0x90] ss:$12 sps:$4 sm:$0xff]  }
  0x15   :  { %1711 = vmatpush3.bf16.msra.mxu1 %v2235_v17  ;;  %v2254_v20 = vld [vmem:[%s2882_s1 + $0x68] ss:$12 sps:$4 sm:$0xff]   ;;  %v2260_v21 = vld [vmem:[%s2882_s1 + $0xac] ss:$12 sps:$4 sm:$0xff]   ;;  %v2269_v23 = vld [vmem:[#allocation2] sm:$0x3] }
  0x16   :  { %1712 = vmatprep.subr.bf16.mxu1 %v2111_v2  ;;  %v2267_v22 = vld [vmem:[%s2882_s1 + $0xa8] ss:$12 sps:$4 sm:$0xff]   ;;  %v2275_v24 = vld [vmem:[%s2882_s1 + $0x80] ss:$12 sps:$4 sm:$0xff]   ;;  %v71_v25 = vpack.c.bf16 %v2269_v23, %v2269_v23  ;;  %v2286_v26 = vld [vmem:[%s2882_s1 + $0x98] ss:$12 sps:$4 sm:$0xff]  }
  0x17   :  { %211 = vmatpush1.bf16.msra.mxu0 %v2229_v16  ;;  %v2294_v27 = vld [vmem:[%s2882_s1 + $0xb0] ss:$12 sps:$4 sm:$0xff]   ;;  %v61_v28 = vld [vmem:[%s2881_s0] sm:$0x11]  ;;  %v62_v58 = vld [vmem:[%s2881_s0 + $0x8] sm:$0x1] }
  0x18   :  { %212 = vmatprep.subr.bf16.mxu0 %v2241_v18  ;;  %v63_v29 = vld [vmem:[%s2881_s0 + $0xc] sm:$0x11]  ;;  %v65_v30 = vunpack.c.l.bf16 %v61_v28  ;;  %v66_v44 = vunpack.c.h.bf16 %v61_v28  ;;  %v2343_v55 = vld [vmem:[%s2883_s2] ss:$0 sm:$0xff]  ;;  %v64_v59 = vld [vmem:[%s2881_s0 + $0x14] sm:$0x1]  ;;  %v67_v62 = vunpack.c.l.bf16 %v62_v58 }
  0x19   :  { %1713 = vmatpush3.bf16.msra.mxu1 %v2254_v20  ;;  %v68_v31 = vunpack.c.l.bf16 %v63_v29  ;;  %v69_v46 = vunpack.c.h.bf16 %v63_v29  ;;  %v70_v63 = vunpack.c.l.bf16 %v64_v59  ;;  %vm331_vm1 = vcmask 1041409  }
  0x1a   :  { %1714 = vmatprep.subr.bf16.mxu1 %v2111_v2  ;;  %vm343_vm2 = vcmask 253952   ;;  %vm512_vm3 = vcmask 254977   ;;  %vm684_vm4 = vcmask 256002   ;;  %vm857_vm5 = vcmask 257027  }
  0x1b   :  { %213 = vmatpush1.bf16.msra.mxu0 %v2248_v19  ;;  %vm1030_vm6 = vcmask 258052   ;;  %vm1203_vm7 = vcmask 259077   ;;  %vm1376_vm8 = vcmask 260102   ;;  %vm1549_vm9 = vcmask 261127  }
  0x1c   :  { %214 = vmatprep.subr.bf16.mxu0 %v2260_v21 }
  0x1d   :  { %1715 = vmatpush3.bf16.msra.mxu1 %v2275_v24 }
  0x1e   :  { %1716 = vmatprep.subr.bf16.mxu1 %v2111_v2 }
  0x1f   :  { %215 = vmatpush1.bf16.msra.mxu0 %v2267_v22 }
  0x20   :  { %366 = vmatprep.subr.bf16.mxu0 %v2140_v0 }
  0x21   :  { %1717 = vmatpush3.bf16.msra.mxu1 %v2286_v26 }
  0x22   :  { %233 = vmatmul.mubr.bf16.vlgmr.msra.gmra.mrb[0].mxu0 %v71_v25  ;;  %1718 = vmatprep.subr.bf16.mxu1 %v2111_v2 }
  0x23   :  { %367 = vmatpush1.bf16.msra.mxu0 %v2145_v1  ;;  %398 = vmatprep.mubr.bf16.mxu0 %v2112_v3 }
  0x24   :  { %368 = vmatprep.subr.bf16.mxu0 %v2154_v4 }
  0x25   :  { %1719 = vmatpush3.bf16.msra.mxu1 %v2294_v27 }
  0x26   :  { %1724 = vmatprep.subr.bf16.mxu1 %v2111_v2 }
  0x27   :  { %369 = vmatpush1.bf16.msra.mxu0 %v2162_v5 }
  0x28   :  { %370 = vmatprep.subr.bf16.mxu0 %v2168_v6  ;;  %1721 = vmatmul.mubr.bf16.vlgmr.msra.gmra.mrb[0].mxu1 %v71_v25 }
  0x29   :  { %1725 = vmatpush3.bf16.msra.mxu1 %v2185_v9  ;;  %1740 = vmatprep.mubr.msk.bf16.mxu1 %vm2113_vm0, %v2111_v2 }
  0x2a   :  { %1726 = vmatprep.subr.bf16.mxu1 %v2111_v2 }
  0x2b   :  { %371 = vmatpush1.bf16.msra.mxu0 %v2174_v7 }
  0x2c   :  { %372 = vmatprep.subr.bf16.mxu0 %v2180_v8 }
  0x2d   :  { %1727 = vmatpush3.bf16.msra.mxu1 %v2204_v12 }
  0x2e   :  { %1728 = vmatprep.subr.bf16.mxu1 %v2111_v2 }
  0x2f   :  { %373 = vmatpush1.bf16.msra.mxu0 %v2191_v10 }
  0x30   :  { %374 = vmatprep.subr.bf16.mxu0 %v2198_v11 }
  0x31   :  { %1729 = vmatpush3.bf16.msra.mxu1 %v2216_v14 }
  0x32   :  { %1730 = vmatprep.subr.bf16.mxu1 %v2111_v2 }
  0x33   :  { %375 = vmatpush1.bf16.msra.mxu0 %v2209_v13 }
  0x34   :  { %376 = vmatprep.subr.bf16.mxu0 %v2222_v15 }
  0x35   :  { %1731 = vmatpush3.bf16.msra.mxu1 %v2235_v17 }
  0x36   :  { %1732 = vmatprep.subr.bf16.mxu1 %v2111_v2 }
  0x37   :  { %377 = vmatpush1.bf16.msra.mxu0 %v2229_v16 }
  0x38   :  { %378 = vmatprep.subr.bf16.mxu0 %v2241_v18 }
  0x39   :  { %1733 = vmatpush3.bf16.msra.mxu1 %v2254_v20 }
  0x3a   :  { %1734 = vmatprep.subr.bf16.mxu1 %v2111_v2 }
  0x3b   :  { %379 = vmatpush1.bf16.msra.mxu0 %v2248_v19 }
  0x3c   :  { %380 = vmatprep.subr.bf16.mxu0 %v2260_v21 }
  0x3d   :  { %1735 = vmatpush3.bf16.msra.mxu1 %v2275_v24 }
  0x3e   :  { %1736 = vmatprep.subr.bf16.mxu1 %v2111_v2 }
  0x3f   :  { %381 = vmatpush1.bf16.msra.mxu0 %v2267_v22 }
  0x40   :  { %535 = vmatprep.subr.bf16.mxu0 %v2140_v0 }
  0x41   :  { %1737 = vmatpush3.bf16.msra.mxu1 %v2286_v26 }
  0x42   :  { %1738 = vmatprep.subr.bf16.mxu1 %v2111_v2 }
  0x45   :  { %1739 = vmatpush3.bf16.msra.mxu1 %v2294_v27 }
  0x46   :  { %1744 = vmatprep.subr.bf16.mxu1 %v2111_v2 }
  0xf5   :  { %v234_v32 = vpop.f32.mrb[0].mxu0 }
  0xf6   :  { %v283_v33 = vrot.slane %v234_v32, 1  ;;  %v289_v34 = vadd.f32 %v234_v32, %v65_v30  ;;  %v236_v35 = vpop.f32.mrb[1].mxu0 }
  0xf7   :  { %v238_v36 = vpop.f32.mrb[2].mxu0  ;;  %v284_v47 = vrot.slane %v236_v35, 1  ;;  %v290_v49 = vadd.f32 %v236_v35, %v66_v44 }
  0xf8   :  { %v291_v37 = vadd.f32 %v283_v33, %v68_v31  ;;  %v1600_v38 = vmul.f32 -1.442695, %v289_v34  ;;  %v239_v39 = vpop.f32.mrb[3].mxu0 }
  0xf9   :  { %v292_v52 = vadd.f32 %v284_v47, %v69_v46  ;;  %v1601_v54 = vmul.f32 -1.442695, %v290_v49 }
  0xfa   :  { %1902 = vpow2.f32 %v1600_v38  ;;  %v1602_v40 = vmul.f32 -1.442695, %v291_v37 }
  0xfb   :  { %v275_v41 = vpop.f32.mrb[0].mxu1  ;;  %v1603_v56 = vmul.f32 -1.442695, %v292_v52 }
  0xfc   :  { %1904 = vpow2.f32 %v1602_v40  ;;  %v1722_v42 = vpop.f32.mrb[1].mxu1  ;;  %v317_v57 = vadd.f32 %v2343_v55, %v275_v41 }
  0xfd   :  { %v278_v43 = vpop.f32.mrb[2].mxu1 }
  0xfe   :  { %v1723_v45 = vpop.f32.mrb[3].mxu1  ;;  %v319_v60 = vrot.slane %v317_v57, 1 }
 0x104   :  { %v1903_v48 = vpop.eup %1902 }
 0x105   :  { %v305_v50 = vadd.f32 1.0, %v1903_v48 }
 0x106   :  { %v1905_v51 = vpop.eup %1904 }
 0x107   :  { %v307_v53 = vadd.f32 1.0, %v1905_v51  ;;  %1906 = vrcp.f32 %v305_v50 }
 0x109   :  { %1908 = vrcp.f32 %v307_v53 }
 0x10a   :  { %1910 = vpow2.f32 %v1601_v54  ;;  %v348_v54 = vld [vmem:[%s2881_s0 + $0xc] sm:$0x11] }
 0x10b   :  { %1912 = vpow2.f32 %v1603_v56  ;;  %v346_v56 = vld [vmem:[%s2881_s0] sm:$0x11] }
 0x10c   :  { %v350_v58 = vunpack.c.l.bf16 %v346_v56 }
 0x111   :  { %v1907_v61 = vpop.eup %1906 }
 0x112   :  { %v322_v25 = vmul.f32 %v1907_v61, %v317_v57  ;;  %v353_v57 = vunpack.c.l.bf16 %v348_v54 }
 0x113   :  { %v1909_v28 = vpop.eup %1908 }
 0x114   :  { %v323_v29 = vmul.f32 %v1909_v28, %v319_v60  ;;  %v1911_v30 = vpop.eup %1910  ;;  %v324_v31 = vadd.f32 %v322_v25, %v67_v62 }
 0x115   :  { %v1913_v33 = vpop.eup %1912  ;;  %v306_v34 = vadd.f32 1.0, %v1911_v30 }
 0x116   :  { %v325_v32 = vadd.f32 %v323_v29, %v70_v63  ;;  %v308_v35 = vadd.f32 1.0, %v1913_v33 }
 0x118   :  { %1914 = vtanh.f32 %v325_v32 }
 0x119   :  { %1916 = vtanh.f32 %v324_v31 }
 0x11a   :  { %1918 = vrcp.f32 %v306_v34 }
 0x11b   :  { %1920 = vrcp.f32 %v308_v35  ;;  %v354_v35 = vunpack.c.h.bf16 %v348_v54 }
 0x122   :  { %v1915_v36 = vpop.eup %1914 }
 0x123   :  { %v330_v37 = vrot.slane %v1915_v36, 7  ;;  %v1917_v38 = vpop.eup %1916 }
 0x124   :  { %v1919_v41 = vpop.eup %1918 }
 0x125   :  { %v332_v39 = vsel %vm331_vm1, %v330_v37, %v1917_v38  ;;  %v1921_v44 = vpop.eup %1920 }
 0x126   :  { %v334_v40 = vsub.f32 %v2269_v23, %v332_v39 }
 0x128   :  { %v339_v42 = vmul.f32 %v1919_v41, %v334_v40  ;;  %v336_v43 = vrot.slane %v334_v40, 1 }
 0x12a   :  { %v2354_v45 = vadd.f32 %v1917_v38, %v339_v42  ;;  %v340_v46 = vmul.f32 %v1921_v44, %v336_v43 }
 0x12c   :  { %344 = vst.msk [vmem:[#allocation3] sm:$0x1] %vm343_vm2, %v2354_v45  ;;  %v2357_v47 = vadd.f32 %v1915_v36, %v340_v46  ;;  %v356_v48 = vpack.c.bf16 %v2354_v45, %v2354_v45  ;;  %v351_v36 = vunpack.c.h.bf16 %v346_v56 }
 0x12e   :  { %345 = vst.msk [vmem:[#allocation3 + $0x8] sm:$0x1] %vm343_vm2, %v2357_v47  ;;  %v357_v23 = vpack.c.bf16 %v2357_v47, %v2357_v47  ;;  %v360_v50 = vunpack.c.l.b16 %v356_v48  ;;  %v349_v48 = vld [vmem:[%s2881_s0 + $0x14] sm:$0x1] }
 0x130   :  { %v361_v49 = vunpack.c.l.b16 %v357_v23 }
 0x132   :  { %v362_v51 = vrot.slane %v361_v49, 7  ;;  %v347_v49 = vld [vmem:[%s2881_s0 + $0x8] sm:$0x1] }
 0x134   :  { %v363_v52 = vsel %vm331_vm1, %v362_v51, %v360_v50  ;;  %v355_v50 = vunpack.c.l.bf16 %v349_v48  ;;  %v515_v48 = vld [vmem:[%s2881_s0] sm:$0x22] }
 0x135   :  { %v364_v53 = vpack.c.b16 %v363_v52, %v363_v52  ;;  %v352_v52 = vunpack.c.l.bf16 %v347_v49  ;;  %v519_v49 = vunpack.c.l.bf16 %v515_v48 }
 0x137   :  { %399 = vmatmul.mubr.bf16.vlgmr.msra.gmra.mrb[4].mxu0 %v364_v53  ;;  %1741 = vmatmul.mubr.bf16.vlgmr.msra.gmra.mrb[4].mxu1 %v364_v53 }
 0x138   :  { %536 = vmatpush1.bf16.msra.mxu0 %v2145_v1  ;;  %1745 = vmatpush3.bf16.msra.mxu1 %v2185_v9 }
 0x139   :  { %537 = vmatprep.subr.bf16.mxu0 %v2154_v4  ;;  %1746 = vmatprep.subr.bf16.mxu1 %v2111_v2 }
 0x13a   :  { %567 = vmatprep.mubr.bf16.mxu0 %v2112_v3  ;;  %1760 = vmatprep.mubr.msk.bf16.mxu1 %vm2113_vm0, %v2111_v2 }
 0x13c   :  { %538 = vmatpush1.bf16.msra.mxu0 %v2162_v5  ;;  %1747 = vmatpush3.bf16.msra.mxu1 %v2204_v12 }
 0x13d   :  { %539 = vmatprep.subr.bf16.mxu0 %v2168_v6  ;;  %1748 = vmatprep.subr.bf16.mxu1 %v2111_v2 }
 0x140   :  { %540 = vmatpush1.bf16.msra.mxu0 %v2174_v7  ;;  %1749 = vmatpush3.bf16.msra.mxu1 %v2216_v14 }
 0x141   :  { %541 = vmatprep.subr.bf16.mxu0 %v2180_v8  ;;  %1750 = vmatprep.subr.bf16.mxu1 %v2111_v2 }
 0x144   :  { %542 = vmatpush1.bf16.msra.mxu0 %v2191_v10  ;;  %1751 = vmatpush3.bf16.msra.mxu1 %v2235_v17 }
 0x145   :  { %543 = vmatprep.subr.bf16.mxu0 %v2198_v11  ;;  %1752 = vmatprep.subr.bf16.mxu1 %v2111_v2 }
 0x148   :  { %544 = vmatpush1.bf16.msra.mxu0 %v2209_v13  ;;  %1753 = vmatpush3.bf16.msra.mxu1 %v2254_v20 }
 0x149   :  { %545 = vmatprep.subr.bf16.mxu0 %v2222_v15  ;;  %1754 = vmatprep.subr.bf16.mxu1 %v2111_v2 }
 0x14c   :  { %546 = vmatpush1.bf16.msra.mxu0 %v2229_v16  ;;  %1755 = vmatpush3.bf16.msra.mxu1 %v2275_v24 }
 0x14d   :  { %547 = vmatprep.subr.bf16.mxu0 %v2241_v18  ;;  %1756 = vmatprep.subr.bf16.mxu1 %v2111_v2 }
 0x150   :  { %548 = vmatpush1.bf16.msra.mxu0 %v2248_v19  ;;  %1757 = vmatpush3.bf16.msra.mxu1 %v2286_v26 }
 0x151   :  { %549 = vmatprep.subr.bf16.mxu0 %v2260_v21  ;;  %1758 = vmatprep.subr.bf16.mxu1 %v2111_v2 }
 0x154   :  { %550 = vmatpush1.bf16.msra.mxu0 %v2267_v22  ;;  %1759 = vmatpush3.bf16.msra.mxu1 %v2294_v27 }
 0x155   :  { %708 = vmatprep.subr.bf16.mxu0 %v2140_v0  ;;  %1764 = vmatprep.subr.bf16.mxu1 %v2111_v2 }
 0x20a   :  { %v400_v59 = vpop.f32.mrb[4].mxu0  ;;  %v441_v60 = vpop.f32.mrb[4].mxu1 }
 0x20b   :  { %v449_v61 = vrot.slane %v400_v59, 7  ;;  %v457_v62 = vadd.f32 %v400_v59, %v353_v57  ;;  %v402_v63 = vpop.f32.mrb[5].mxu0  ;;  %v1742_v25 = vpop.f32.mrb[5].mxu1  ;;  %v483_v23 = vadd.f32 %v2343_v55, %v441_v60 }
 0x20c   :  { %v404_v28 = vpop.f32.mrb[6].mxu0  ;;  %v444_v29 = vpop.f32.mrb[6].mxu1  ;;  %v450_v37 = vrot.slane %v402_v63, 7  ;;  %v458_v38 = vadd.f32 %v402_v63, %v354_v35 }
 0x20d   :  { %v455_v30 = vadd.f32 %v449_v61, %v350_v58  ;;  %v1606_v31 = vmul.f32 -1.442695, %v457_v62  ;;  %v405_v32 = vpop.f32.mrb[7].mxu0  ;;  %v1743_v33 = vpop.f32.mrb[7].mxu1  ;;  %v485_v53 = vrot.slane %v483_v23, 7 }
 0x20e   :  { %v456_v41 = vadd.f32 %v450_v37, %v351_v36  ;;  %v1607_v44 = vmul.f32 -1.442695, %v458_v38 }
 0x20f   :  { %v1604_v34 = vmul.f32 -1.442695, %v455_v30  ;;  %1922 = vpow2.f32 %v1606_v31 }
 0x210   :  { %v1605_v46 = vmul.f32 -1.442695, %v456_v41 }
 0x211   :  { %1924 = vpow2.f32 %v1604_v34 }
 0x219   :  { %v1923_v39 = vpop.eup %1922 }
 0x21a   :  { %v473_v40 = vadd.f32 1.0, %v1923_v39 }
 0x21b   :  { %v1925_v42 = vpop.eup %1924 }
 0x21c   :  { %v471_v43 = vadd.f32 1.0, %v1925_v42  ;;  %1926 = vrcp.f32 %v473_v40 }
 0x21e   :  { %1928 = vrcp.f32 %v471_v43 }
 0x21f   :  { %1930 = vpow2.f32 %v1607_v44 }
 0x220   :  { %1932 = vpow2.f32 %v1605_v46 }
 0x226   :  { %v1927_v51 = vpop.eup %1926 }
 0x227   :  { %v489_v54 = vmul.f32 %v1927_v51, %v483_v23  ;;  %v517_v23 = vld [vmem:[%s2881_s0 + $0xc] sm:$0x22] }
 0x228   :  { %v1929_v56 = vpop.eup %1928 }
 0x229   :  { %v488_v57 = vmul.f32 %v1929_v56, %v485_v53  ;;  %v491_v58 = vadd.f32 %v489_v54, %v355_v50  ;;  %v1931_v59 = vpop.eup %1930  ;;  %v522_v50 = vunpack.c.l.bf16 %v517_v23 }
 0x22a   :  { %v1933_v62 = vpop.eup %1932  ;;  %v474_v63 = vadd.f32 1.0, %v1931_v59 }
 0x22b   :  { %v490_v61 = vadd.f32 %v488_v57, %v352_v52  ;;  %1934 = vtanh.f32 %v491_v58  ;;  %v472_v25 = vadd.f32 1.0, %v1933_v62 }
 0x22d   :  { %1936 = vtanh.f32 %v490_v61 }
 0x22e   :  { %1938 = vrcp.f32 %v474_v63 }
 0x22f   :  { %1940 = vrcp.f32 %v472_v25 }
 0x235   :  { %v1935_v60 = vpop.eup %1934 }
 0x236   :  { %v497_v28 = vrot.slane %v1935_v60, 1 }
 0x237   :  { %v1937_v29 = vpop.eup %1936 }
 0x238   :  { %v496_v30 = vrot.slane %v1937_v29, 1  ;;  %v501_v31 = vsub.f32 %v2357_v47, %v497_v28  ;;  %v1939_v34 = vpop.eup %1938 }
 0x239   :  { %v1941_v37 = vpop.eup %1940 }
 0x23a   :  { %v500_v32 = vsub.f32 %v2354_v45, %v496_v30  ;;  %v505_v33 = vrot.slane %v501_v31, 7  ;;  %v523_v31 = vunpack.c.h.bf16 %v517_v23 }
 0x23c   :  { %v504_v35 = vrot.slane %v500_v32, 7  ;;  %v509_v36 = vmul.f32 %v1939_v34, %v505_v33 }
 0x23e   :  { %v508_v38 = vmul.f32 %v1941_v37, %v504_v35  ;;  %v2415_v39 = vadd.f32 %v1935_v60, %v509_v36 }
 0x240   :  { %v2417_v40 = vadd.f32 %v1937_v29, %v508_v38  ;;  %514 = vst.msk [vmem:[#allocation3 + $0x8] sm:$0x2] %vm512_vm3, %v2415_v39  ;;  %v526_v45 = vpack.c.bf16 %v2415_v39, %v2415_v39  ;;  %v520_v29 = vunpack.c.h.bf16 %v515_v48 }
 0x242   :  { %513 = vst.msk [vmem:[#allocation3] sm:$0x2] %vm512_vm3, %v2417_v40  ;;  %v525_v47 = vpack.c.bf16 %v2417_v40, %v2417_v40  ;;  %v530_v42 = vunpack.c.l.b16 %v526_v45 }
 0x244   :  { %v529_v41 = vunpack.c.l.b16 %v525_v47 }
 0x246   :  { %v531_v43 = vrot.slane %v529_v41, 1 }
 0x248   :  { %v532_v44 = vsel %vm331_vm1, %v530_v42, %v531_v43  ;;  %v516_v42 = vld [vmem:[%s2881_s0 + $0x8] sm:$0x2]  ;;  %v518_v43 = vld [vmem:[%s2881_s0 + $0x14] sm:$0x2] }
 0x249   :  { %v533_v46 = vpack.c.b16 %v532_v44, %v532_v44  ;;  %v521_v44 = vunpack.c.l.bf16 %v516_v42  ;;  %v524_v23 = vunpack.c.l.bf16 %v518_v43 }
 0x24b   :  { %568 = vmatmul.mubr.bf16.vlgmr.msra.gmra.mrb[8].mxu0 %v533_v46  ;;  %1761 = vmatmul.mubr.bf16.vlgmr.msra.gmra.mrb[8].mxu1 %v533_v46 }
 0x24c   :  { %709 = vmatpush1.bf16.msra.mxu0 %v2145_v1  ;;  %1765 = vmatpush3.bf16.msra.mxu1 %v2185_v9 }
 0x24d   :  { %710 = vmatprep.subr.bf16.mxu0 %v2154_v4  ;;  %1766 = vmatprep.subr.bf16.mxu1 %v2111_v2 }
 0x24e   :  { %740 = vmatprep.mubr.bf16.mxu0 %v2112_v3  ;;  %1780 = vmatprep.mubr.msk.bf16.mxu1 %vm2113_vm0, %v2111_v2 }
 0x250   :  { %711 = vmatpush1.bf16.msra.mxu0 %v2162_v5  ;;  %1767 = vmatpush3.bf16.msra.mxu1 %v2204_v12 }
 0x251   :  { %712 = vmatprep.subr.bf16.mxu0 %v2168_v6  ;;  %1768 = vmatprep.subr.bf16.mxu1 %v2111_v2 }
 0x254   :  { %713 = vmatpush1.bf16.msra.mxu0 %v2174_v7  ;;  %1769 = vmatpush3.bf16.msra.mxu1 %v2216_v14 }
 0x255   :  { %714 = vmatprep.subr.bf16.mxu0 %v2180_v8  ;;  %1770 = vmatprep.subr.bf16.mxu1 %v2111_v2 }
 0x258   :  { %715 = vmatpush1.bf16.msra.mxu0 %v2191_v10  ;;  %1771 = vmatpush3.bf16.msra.mxu1 %v2235_v17 }
 0x259   :  { %716 = vmatprep.subr.bf16.mxu0 %v2198_v11  ;;  %1772 = vmatprep.subr.bf16.mxu1 %v2111_v2 }
 0x25c   :  { %717 = vmatpush1.bf16.msra.mxu0 %v2209_v13  ;;  %1773 = vmatpush3.bf16.msra.mxu1 %v2254_v20 }
 0x25d   :  { %718 = vmatprep.subr.bf16.mxu0 %v2222_v15  ;;  %1774 = vmatprep.subr.bf16.mxu1 %v2111_v2 }
 0x260   :  { %719 = vmatpush1.bf16.msra.mxu0 %v2229_v16  ;;  %1775 = vmatpush3.bf16.msra.mxu1 %v2275_v24 }
 0x261   :  { %720 = vmatprep.subr.bf16.mxu0 %v2241_v18  ;;  %1776 = vmatprep.subr.bf16.mxu1 %v2111_v2 }
 0x264   :  { %721 = vmatpush1.bf16.msra.mxu0 %v2248_v19  ;;  %1777 = vmatpush3.bf16.msra.mxu1 %v2286_v26 }
 0x265   :  { %722 = vmatprep.subr.bf16.mxu0 %v2260_v21  ;;  %1778 = vmatprep.subr.bf16.mxu1 %v2111_v2 }
 0x268   :  { %723 = vmatpush1.bf16.msra.mxu0 %v2267_v22  ;;  %1779 = vmatpush3.bf16.msra.mxu1 %v2294_v27 }
 0x269   :  { %881 = vmatprep.subr.bf16.mxu0 %v2140_v0  ;;  %1784 = vmatprep.subr.bf16.mxu1 %v2111_v2 }
 0x31e   :  { %v569_v51 = vpop.f32.mrb[8].mxu0  ;;  %v610_v52 = vpop.f32.mrb[8].mxu1 }
 0x31f   :  { %v618_v53 = vrot.slane %v569_v51, 6  ;;  %v620_v54 = vrot.slane %v569_v51, 7  ;;  %v571_v56 = vpop.f32.mrb[9].mxu0  ;;  %v1762_v57 = vpop.f32.mrb[9].mxu1  ;;  %v654_v41 = vadd.f32 %v2343_v55, %v610_v52 }
 0x320   :  { %v573_v58 = vpop.f32.mrb[10].mxu0  ;;  %v613_v59 = vpop.f32.mrb[10].mxu1  ;;  %v619_v30 = vrot.slane %v571_v56, 6  ;;  %v621_v32 = vrot.slane %v571_v56, 7 }
 0x321   :  { %v626_v61 = vadd.f32 %v618_v53, %v519_v49  ;;  %v628_v62 = vadd.f32 %v620_v54, %v522_v50  ;;  %v574_v63 = vpop.f32.mrb[11].mxu0  ;;  %v1763_v25 = vpop.f32.mrb[11].mxu1  ;;  %v656_v46 = vrot.slane %v654_v41, 6  ;;  %v657_v49 = vrot.slane %v654_v41, 7 }
 0x322   :  { %v627_v33 = vadd.f32 %v619_v30, %v520_v29  ;;  %v629_v35 = vadd.f32 %v621_v32, %v523_v31 }
 0x323   :  { %v1608_v60 = vmul.f32 -1.442695, %v626_v61  ;;  %v1610_v28 = vmul.f32 -1.442695, %v628_v62 }
 0x324   :  { %v1609_v47 = vmul.f32 -1.442695, %v627_v33  ;;  %v1611_v45 = vmul.f32 -1.442695, %v629_v35 }
 0x325   :  { %1942 = vpow2.f32 %v1608_v60 }
 0x326   :  { %1944 = vpow2.f32 %v1610_v28 }
 0x32f   :  { %v1943_v34 = vpop.eup %1942 }
 0x330   :  { %v1945_v36 = vpop.eup %1944  ;;  %v642_v37 = vadd.f32 1.0, %v1943_v34 }
 0x331   :  { %v644_v38 = vadd.f32 1.0, %v1945_v36 }
 0x332   :  { %1946 = vrcp.f32 %v642_v37 }
 0x333   :  { %1948 = vrcp.f32 %v644_v38 }
 0x334   :  { %1950 = vpow2.f32 %v1609_v47 }
 0x335   :  { %1952 = vpow2.f32 %v1611_v45 }
 0x33c   :  { %v1947_v48 = vpop.eup %1946 }
 0x33d   :  { %v1949_v50 = vpop.eup %1948  ;;  %v660_v51 = vmul.f32 %v1947_v48, %v656_v46 }
 0x33e   :  { %v661_v53 = vmul.f32 %v1949_v50, %v657_v49  ;;  %v1951_v56 = vpop.eup %1950 }
 0x33f   :  { %v662_v54 = vadd.f32 %v660_v51, %v521_v44  ;;  %v1953_v57 = vpop.eup %1952  ;;  %v643_v58 = vadd.f32 1.0, %v1951_v56 }
 0x340   :  { %v663_v52 = vadd.f32 %v661_v53, %v524_v23  ;;  %v645_v59 = vadd.f32 1.0, %v1953_v57  ;;  %v688_v57 = vld [vmem:[%s2881_s0 + $0x8] sm:$0x2] }
 0x341   :  { %1954 = vtanh.f32 %v662_v54 }
 0x342   :  { %1956 = vtanh.f32 %v663_v52 }
 0x343   :  { %1958 = vrcp.f32 %v643_v58  ;;  %v690_v58 = vld [vmem:[%s2881_s0 + $0x14] sm:$0x2] }
 0x344   :  { %1960 = vrcp.f32 %v645_v59  ;;  %v693_v59 = vunpack.c.l.bf16 %v688_v57 }
 0x34b   :  { %v1955_v61 = vpop.eup %1954 }
 0x34c   :  { %v1957_v62 = vpop.eup %1956  ;;  %v668_v63 = vrot.slane %v1955_v61, 1 }
 0x34d   :  { %v669_v25 = vrot.slane %v1957_v62, 1  ;;  %v1959_v30 = vpop.eup %1958 }
 0x34e   :  { %v672_v60 = vsub.f32 %v2417_v40, %v668_v63  ;;  %v1961_v32 = vpop.eup %1960  ;;  %v696_v63 = vunpack.c.l.bf16 %v690_v58 }
 0x34f   :  { %v673_v28 = vsub.f32 %v2415_v39, %v669_v25 }
 0x350   :  { %v676_v29 = vrot.slane %v672_v60, 7 }
 0x351   :  { %v677_v31 = vrot.slane %v673_v28, 7 }
 0x352   :  { %v680_v33 = vmul.f32 %v1959_v30, %v676_v29 }
 0x353   :  { %v681_v34 = vmul.f32 %v1961_v32, %v677_v31 }
 0x354   :  { %v2476_v35 = vadd.f32 %v1955_v61, %v680_v33 }
 0x355   :  { %v2478_v36 = vadd.f32 %v1957_v62, %v681_v34 }
 0x356   :  { %685 = vst.msk [vmem:[#allocation3] sm:$0x4] %vm684_vm4, %v2476_v35  ;;  %v697_v37 = vpack.c.bf16 %v2476_v35, %v2476_v35 }
 0x357   :  { %686 = vst.msk [vmem:[#allocation3 + $0x8] sm:$0x4] %vm684_vm4, %v2478_v36  ;;  %v698_v39 = vpack.c.bf16 %v2478_v36, %v2478_v36 }
 0x358   :  { %v701_v40 = vunpack.c.l.b16 %v697_v37 }
 0x359   :  { %v702_v38 = vunpack.c.l.b16 %v698_v39 }
 0x35a   :  { %v703_v47 = vrot.slane %v701_v40, 2 }
 0x35b   :  { %v704_v45 = vrot.slane %v702_v38, 1 }
 0x35d   :  { %v705_v41 = vsel %vm331_vm1, %v704_v45, %v703_v47 }
 0x35e   :  { %v706_v42 = vpack.c.b16 %v705_v41, %v705_v41 }
 0x360   :  { %741 = vmatmul.mubr.bf16.vlgmr.msra.gmra.mrb[12].mxu0 %v706_v42  ;;  %1781 = vmatmul.mubr.bf16.vlgmr.msra.gmra.mrb[12].mxu1 %v706_v42 }
 0x361   :  { %882 = vmatpush1.bf16.msra.mxu0 %v2145_v1  ;;  %1785 = vmatpush3.bf16.msra.mxu1 %v2185_v9  ;;  %v687_v1 = vld [vmem:[%s2881_s0] sm:$0x22] }
 0x362   :  { %883 = vmatprep.subr.bf16.mxu0 %v2154_v4  ;;  %1786 = vmatprep.subr.bf16.mxu1 %v2111_v2  ;;  %v689_v4 = vld [vmem:[%s2881_s0 + $0xc] sm:$0x22] }
 0x363   :  { %913 = vmatprep.mubr.bf16.mxu0 %v2112_v3  ;;  %1800 = vmatprep.mubr.msk.bf16.mxu1 %vm2113_vm0, %v2111_v2  ;;  %v695_v44 = vunpack.c.h.bf16 %v689_v4 }
 0x365   :  { %884 = vmatpush1.bf16.msra.mxu0 %v2162_v5  ;;  %1787 = vmatpush3.bf16.msra.mxu1 %v2204_v12  ;;  %v691_v5 = vunpack.c.l.bf16 %v687_v1 }
 0x366   :  { %885 = vmatprep.subr.bf16.mxu0 %v2168_v6  ;;  %1788 = vmatprep.subr.bf16.mxu1 %v2111_v2  ;;  %v694_v6 = vunpack.c.l.bf16 %v689_v4 }
 0x369   :  { %886 = vmatpush1.bf16.msra.mxu0 %v2174_v7  ;;  %1789 = vmatpush3.bf16.msra.mxu1 %v2216_v14 }
 0x36a   :  { %887 = vmatprep.subr.bf16.mxu0 %v2180_v8  ;;  %1790 = vmatprep.subr.bf16.mxu1 %v2111_v2 }
 0x36d   :  { %888 = vmatpush1.bf16.msra.mxu0 %v2191_v10  ;;  %1791 = vmatpush3.bf16.msra.mxu1 %v2235_v17 }
 0x36e   :  { %889 = vmatprep.subr.bf16.mxu0 %v2198_v11  ;;  %1792 = vmatprep.subr.bf16.mxu1 %v2111_v2 }
 0x371   :  { %890 = vmatpush1.bf16.msra.mxu0 %v2209_v13  ;;  %1793 = vmatpush3.bf16.msra.mxu1 %v2254_v20 }
 0x372   :  { %891 = vmatprep.subr.bf16.mxu0 %v2222_v15  ;;  %1794 = vmatprep.subr.bf16.mxu1 %v2111_v2 }
 0x375   :  { %892 = vmatpush1.bf16.msra.mxu0 %v2229_v16  ;;  %1795 = vmatpush3.bf16.msra.mxu1 %v2275_v24 }
 0x376   :  { %893 = vmatprep.subr.bf16.mxu0 %v2241_v18  ;;  %1796 = vmatprep.subr.bf16.mxu1 %v2111_v2 }
 0x379   :  { %894 = vmatpush1.bf16.msra.mxu0 %v2248_v19  ;;  %1797 = vmatpush3.bf16.msra.mxu1 %v2286_v26 }
 0x37a   :  { %895 = vmatprep.subr.bf16.mxu0 %v2260_v21  ;;  %1798 = vmatprep.subr.bf16.mxu1 %v2111_v2 }
 0x37d   :  { %896 = vmatpush1.bf16.msra.mxu0 %v2267_v22  ;;  %1799 = vmatpush3.bf16.msra.mxu1 %v2294_v27  ;;  %v692_v22 = vunpack.c.h.bf16 %v687_v1 }
 0x37e   :  { %1054 = vmatprep.subr.bf16.mxu0 %v2140_v0  ;;  %1804 = vmatprep.subr.bf16.mxu1 %v2111_v2 }
 0x433   :  { %v742_v7 = vpop.f32.mrb[12].mxu0  ;;  %v783_v8 = vpop.f32.mrb[12].mxu1 }
 0x434   :  { %v791_v9 = vrot.slane %v742_v7, 5  ;;  %v793_v10 = vrot.slane %v742_v7, 6  ;;  %v744_v11 = vpop.f32.mrb[13].mxu0  ;;  %v1782_v12 = vpop.f32.mrb[13].mxu1  ;;  %v827_v52 = vadd.f32 %v2343_v55, %v783_v8 }
 0x435   :  { %v746_v13 = vpop.f32.mrb[14].mxu0  ;;  %v786_v0 = vpop.f32.mrb[14].mxu1  ;;  %v792_v43 = vrot.slane %v744_v11, 5  ;;  %v794_v46 = vrot.slane %v744_v11, 6 }
 0x436   :  { %v799_v14 = vadd.f32 %v791_v9, %v691_v5  ;;  %v801_v15 = vadd.f32 %v793_v10, %v694_v6  ;;  %v747_v16 = vpop.f32.mrb[15].mxu0  ;;  %v1783_v18 = vpop.f32.mrb[15].mxu1  ;;  %v829_v61 = vrot.slane %v827_v52, 5  ;;  %v830_v25 = vrot.slane %v827_v52, 6 }
 0x437   :  { %v800_v48 = vadd.f32 %v792_v43, %v692_v22  ;;  %v802_v49 = vadd.f32 %v794_v46, %v695_v44  ;;  %v2557_v16 = vld [vmem:[%s2882_s1 + $0x8] ss:$12 sps:$4 sm:$0xff]   ;;  %v2592_v43 = vld [vmem:[%s2882_s1 + $0x30] ss:$12 sps:$4 sm:$0xff]   ;;  %v2598_v44 = vld [vmem:[%s2882_s1 + $0x38] ss:$12 sps:$4 sm:$0xff]  }
 0x438   :  { %v1612_v19 = vmul.f32 -1.442695, %v799_v14  ;;  %v1614_v21 = vmul.f32 -1.442695, %v801_v15  ;;  %v2551_v15 = vld [vmem:[%s2882_s1] ss:$12 sps:$4 sm:$0xff]  }
 0x439   :  { %v1613_v54 = vmul.f32 -1.442695, %v800_v48  ;;  %v1615_v56 = vmul.f32 -1.442695, %v802_v49  ;;  %v2563_v18 = vld [vmem:[%s2882_s1 + $0x1c] ss:$12 sps:$4 sm:$0xff]  }
 0x43a   :  { %1962 = vpow2.f32 %v1612_v19  ;;  %v2573_v19 = vld [vmem:[%s2882_s1 + $0x18] ss:$12 sps:$4 sm:$0xff]   ;;  %v2585_v22 = vld [vmem:[%s2882_s1 + $0x34] ss:$12 sps:$4 sm:$0xff]  }
 0x43b   :  { %1964 = vpow2.f32 %v1614_v21  ;;  %v2579_v21 = vld [vmem:[%s2882_s1 + $0x20] ss:$12 sps:$4 sm:$0xff]   ;;  %v2611_v48 = vld [vmem:[%s2882_s1 + $0x48] ss:$12 sps:$4 sm:$0xff]  }
 0x43c   :  { %v2604_v46 = vld [vmem:[%s2882_s1 + $0x4c] ss:$12 sps:$4 sm:$0xff]  }
 0x43d   :  { %v2625_v49 = vld [vmem:[%s2882_s1 + $0x60] ss:$12 sps:$4 sm:$0xff]  }
 0x444   :  { %v1963_v23 = vpop.eup %1962 }
 0x445   :  { %v1965_v50 = vpop.eup %1964  ;;  %v815_v51 = vadd.f32 1.0, %v1963_v23  ;;  %v2618_v23 = vld [vmem:[%s2882_s1 + $0x64] ss:$12 sps:$4 sm:$0xff]  }
 0x446   :  { %v817_v53 = vadd.f32 1.0, %v1965_v50  ;;  %v2639_v50 = vld [vmem:[%s2882_s1 + $0x78] ss:$12 sps:$4 sm:$0xff]  }
 0x447   :  { %1966 = vrcp.f32 %v815_v51  ;;  %v2653_v51 = vld [vmem:[%s2882_s1 + $0x90] ss:$12 sps:$4 sm:$0xff]  }
 0x448   :  { %1968 = vrcp.f32 %v817_v53  ;;  %v2667_v53 = vld [vmem:[%s2882_s1 + $0xa8] ss:$12 sps:$4 sm:$0xff]  }
 0x449   :  { %1970 = vpow2.f32 %v1613_v54  ;;  %v860_v54 = vld [vmem:[%s2881_s0] sm:$0x44] }
 0x44a   :  { %1972 = vpow2.f32 %v1615_v56  ;;  %v862_v56 = vld [vmem:[%s2881_s0 + $0xc] sm:$0x44]  ;;  %v864_v52 = vunpack.c.l.bf16 %v860_v54 }
 0x44b   :  { %v867_v57 = vunpack.c.l.bf16 %v862_v56 }
 0x451   :  { %v1967_v62 = vpop.eup %1966 }
 0x452   :  { %v1969_v60 = vpop.eup %1968  ;;  %v833_v28 = vmul.f32 %v1967_v62, %v829_v61 }
 0x453   :  { %v834_v29 = vmul.f32 %v1969_v60, %v830_v25  ;;  %v1971_v31 = vpop.eup %1970 }
 0x454   :  { %v835_v30 = vadd.f32 %v833_v28, %v693_v59  ;;  %v1973_v33 = vpop.eup %1972  ;;  %v816_v34 = vadd.f32 1.0, %v1971_v31 }
 0x455   :  { %v836_v32 = vadd.f32 %v834_v29, %v696_v63  ;;  %v818_v37 = vadd.f32 1.0, %v1973_v33 }
 0x456   :  { %1974 = vtanh.f32 %v835_v30 }
 0x457   :  { %1976 = vtanh.f32 %v836_v32 }
 0x458   :  { %1978 = vrcp.f32 %v816_v34  ;;  %v865_v34 = vunpack.c.h.bf16 %v860_v54 }
 0x459   :  { %1980 = vrcp.f32 %v818_v37 }
 0x460   :  { %v1975_v39 = vpop.eup %1974 }
 0x461   :  { %v1977_v40 = vpop.eup %1976  ;;  %v841_v38 = vrot.slane %v1975_v39, 1 }
 0x462   :  { %v842_v47 = vrot.slane %v1977_v40, 1  ;;  %v1979_v1 = vpop.eup %1978 }
 0x463   :  { %v845_v45 = vsub.f32 %v2476_v35, %v841_v38  ;;  %v1981_v5 = vpop.eup %1980 }
 0x464   :  { %v846_v41 = vsub.f32 %v2478_v36, %v842_v47 }
 0x465   :  { %v849_v42 = vrot.slane %v845_v45, 7 }
 0x466   :  { %v850_v4 = vrot.slane %v846_v41, 7 }
 0x467   :  { %v853_v6 = vmul.f32 %v1979_v1, %v849_v42 }
 0x468   :  { %v854_v7 = vmul.f32 %v1981_v5, %v850_v4 }
 0x469   :  { %v2537_v8 = vadd.f32 %v1975_v39, %v853_v6  ;;  %v868_v39 = vunpack.c.h.bf16 %v862_v56 }
 0x46a   :  { %v2539_v9 = vadd.f32 %v1977_v40, %v854_v7  ;;  %v861_v7 = vld [vmem:[%s2881_s0 + $0x8] sm:$0x4] }
 0x46b   :  { %858 = vst.msk [vmem:[#allocation3] sm:$0x8] %vm857_vm5, %v2537_v8  ;;  %v870_v10 = vpack.c.bf16 %v2537_v8, %v2537_v8 }
 0x46c   :  { %859 = vst.msk [vmem:[#allocation3 + $0x8] sm:$0x8] %vm857_vm5, %v2539_v9  ;;  %v871_v35 = vpack.c.bf16 %v2539_v9, %v2539_v9 }
 0x46d   :  { %v874_v36 = vunpack.c.l.b16 %v870_v10  ;;  %v863_v10 = vld [vmem:[%s2881_s0 + $0x14] sm:$0x4] }
 0x46e   :  { %v875_v11 = vunpack.c.l.b16 %v871_v35  ;;  %v866_v35 = vunpack.c.l.bf16 %v861_v7  ;;  %v1033_v7 = vld [vmem:[%s2881_s0] sm:$0x44] }
 0x46f   :  { %v876_v12 = vrot.slane %v874_v36, 3 }
 0x470   :  { %v877_v13 = vrot.slane %v875_v11, 2 }
 0x472   :  { %v878_v0 = vsel %vm331_vm1, %v877_v13, %v876_v12  ;;  %v869_v12 = vunpack.c.l.bf16 %v863_v10  ;;  %v1035_v10 = vld [vmem:[%s2881_s0 + $0xc] sm:$0x44] }
 0x473   :  { %v879_v14 = vpack.c.b16 %v878_v0, %v878_v0 }
 0x475   :  { %914 = vmatmul.mubr.bf16.vlgmr.msra.gmra.mrb[16].mxu0 %v879_v14  ;;  %1801 = vmatmul.mubr.bf16.vlgmr.msra.gmra.mrb[16].mxu1 %v879_v14 }
 0x476   :  { %1055 = vmatpush1.bf16.msra.mxu0 %v2551_v15  ;;  %1805 = vmatpush3.bf16.msra.mxu1 %v2557_v16 }
 0x477   :  { %1056 = vmatprep.subr.bf16.mxu0 %v2563_v18  ;;  %1806 = vmatprep.subr.bf16.mxu1 %v2111_v2 }
 0x478   :  { %1086 = vmatprep.mubr.bf16.mxu0 %v2112_v3  ;;  %1820 = vmatprep.mubr.msk.bf16.mxu1 %vm2113_vm0, %v2111_v2 }
 0x47a   :  { %1057 = vmatpush1.bf16.msra.mxu0 %v2573_v19  ;;  %1807 = vmatpush3.bf16.msra.mxu1 %v2579_v21 }
 0x47b   :  { %1058 = vmatprep.subr.bf16.mxu0 %v2585_v22  ;;  %1808 = vmatprep.subr.bf16.mxu1 %v2111_v2 }
 0x47e   :  { %1059 = vmatpush1.bf16.msra.mxu0 %v2592_v43  ;;  %1809 = vmatpush3.bf16.msra.mxu1 %v2598_v44 }
 0x47f   :  { %1060 = vmatprep.subr.bf16.mxu0 %v2604_v46  ;;  %1810 = vmatprep.subr.bf16.mxu1 %v2111_v2 }
 0x482   :  { %1061 = vmatpush1.bf16.msra.mxu0 %v2611_v48  ;;  %1811 = vmatpush3.bf16.msra.mxu1 %v2235_v17  ;;  %v2632_v17 = vld [vmem:[%s2882_s1 + $0x7c] ss:$12 sps:$4 sm:$0xff]  }
 0x483   :  { %1062 = vmatprep.subr.bf16.mxu0 %v2618_v23  ;;  %1812 = vmatprep.subr.bf16.mxu1 %v2111_v2 }
 0x486   :  { %1063 = vmatpush1.bf16.msra.mxu0 %v2625_v49  ;;  %1813 = vmatpush3.bf16.msra.mxu1 %v2254_v20  ;;  %v2646_v20 = vld [vmem:[%s2882_s1 + $0x94] ss:$12 sps:$4 sm:$0xff]  }
 0x487   :  { %1064 = vmatprep.subr.bf16.mxu0 %v2632_v17  ;;  %1814 = vmatprep.subr.bf16.mxu1 %v2111_v2 }
 0x48a   :  { %1065 = vmatpush1.bf16.msra.mxu0 %v2639_v50  ;;  %1815 = vmatpush3.bf16.msra.mxu1 %v2275_v24  ;;  %v2660_v24 = vld [vmem:[%s2882_s1 + $0xac] ss:$12 sps:$4 sm:$0xff]  }
 0x48b   :  { %1066 = vmatprep.subr.bf16.mxu0 %v2646_v20  ;;  %1816 = vmatprep.subr.bf16.mxu1 %v2111_v2 }
 0x48e   :  { %1067 = vmatpush1.bf16.msra.mxu0 %v2653_v51  ;;  %1817 = vmatpush3.bf16.msra.mxu1 %v2286_v26  ;;  %v2674_v26 = vld [vmem:[%s2882_s1 + $0x4] ss:$12 sps:$4 sm:$0xff]  }
 0x48f   :  { %1068 = vmatprep.subr.bf16.mxu0 %v2660_v24  ;;  %1818 = vmatprep.subr.bf16.mxu1 %v2111_v2 }
 0x492   :  { %1069 = vmatpush1.bf16.msra.mxu0 %v2667_v53  ;;  %1819 = vmatpush3.bf16.msra.mxu1 %v2294_v27 }
 0x493   :  { %1227 = vmatprep.subr.bf16.mxu0 %v2674_v26  ;;  %1824 = vmatprep.subr.bf16.mxu1 %v2111_v2 }
 0x548   :  { %v915_v27 = vpop.f32.mrb[16].mxu0  ;;  %v956_v58 = vpop.f32.mrb[16].mxu1 }
 0x549   :  { %v964_v59 = vrot.slane %v915_v27, 4  ;;  %v966_v61 = vrot.slane %v915_v27, 5  ;;  %v917_v62 = vpop.f32.mrb[17].mxu0  ;;  %v1802_v63 = vpop.f32.mrb[17].mxu1  ;;  %v1000_v6 = vadd.f32 %v2343_v55, %v956_v58 }
 0x54a   :  { %v919_v25 = vpop.f32.mrb[18].mxu0  ;;  %v959_v60 = vpop.f32.mrb[18].mxu1  ;;  %v965_v37 = vrot.slane %v917_v62, 4  ;;  %v967_v40 = vrot.slane %v917_v62, 5 }
 0x54b   :  { %v972_v28 = vadd.f32 %v964_v59, %v864_v52  ;;  %v974_v29 = vadd.f32 %v966_v61, %v867_v57  ;;  %v920_v30 = vpop.f32.mrb[19].mxu0  ;;  %v1803_v31 = vpop.f32.mrb[19].mxu1  ;;  %v1002_v36 = vrot.slane %v1000_v6, 4  ;;  %v1003_v13 = vrot.slane %v1000_v6, 5  ;;  %v2759_v6 = vld [vmem:[%s2882_s1 + $0xb0] ss:$12 sps:$4 sm:$0xff]  }
 0x54c   :  { %v973_v38 = vadd.f32 %v965_v37, %v865_v34  ;;  %v975_v45 = vadd.f32 %v967_v40, %v868_v39 }
 0x54d   :  { %v1616_v32 = vmul.f32 -1.442695, %v972_v28  ;;  %v1618_v33 = vmul.f32 -1.442695, %v974_v29 }
 0x54e   :  { %v1617_v4 = vmul.f32 -1.442695, %v973_v38  ;;  %v1619_v5 = vmul.f32 -1.442695, %v975_v45 }
 0x54f   :  { %1982 = vpow2.f32 %v1616_v32 }
 0x550   :  { %1984 = vpow2.f32 %v1618_v33 }
 0x559   :  { %v1983_v47 = vpop.eup %1982 }
 0x55a   :  { %v1985_v41 = vpop.eup %1984  ;;  %v988_v42 = vadd.f32 1.0, %v1983_v47 }
 0x55b   :  { %v990_v1 = vadd.f32 1.0, %v1985_v41 }
 0x55c   :  { %1986 = vrcp.f32 %v988_v42  ;;  %v2723_v42 = vld [vmem:[%s2882_s1 + $0x50] ss:$12 sps:$4 sm:$0xff]  }
 0x55d   :  { %1988 = vrcp.f32 %v990_v1  ;;  %v2732_v1 = vld [vmem:[%s2882_s1 + $0x68] ss:$12 sps:$4 sm:$0xff]  }
 0x55e   :  { %1990 = vpow2.f32 %v1617_v4  ;;  %v2741_v4 = vld [vmem:[%s2882_s1 + $0x80] ss:$12 sps:$4 sm:$0xff]  }
 0x55f   :  { %1992 = vpow2.f32 %v1619_v5  ;;  %v2750_v5 = vld [vmem:[%s2882_s1 + $0x98] ss:$12 sps:$4 sm:$0xff]  }
 0x566   :  { %v1987_v11 = vpop.eup %1986 }
 0x567   :  { %v1989_v0 = vpop.eup %1988  ;;  %v1006_v14 = vmul.f32 %v1987_v11, %v1002_v36  ;;  %v1040_v36 = vunpack.c.l.bf16 %v1035_v10 }
 0x568   :  { %v1007_v54 = vmul.f32 %v1989_v0, %v1003_v13  ;;  %v1991_v52 = vpop.eup %1990 }
 0x569   :  { %v1008_v56 = vadd.f32 %v1006_v14, %v866_v35  ;;  %v1993_v57 = vpop.eup %1992  ;;  %v989_v27 = vadd.f32 1.0, %v1991_v52  ;;  %v1037_v35 = vunpack.c.l.bf16 %v1033_v7 }
 0x56a   :  { %v1009_v55 = vadd.f32 %v1007_v54, %v869_v12  ;;  %v991_v58 = vadd.f32 1.0, %v1993_v57 }
 0x56b   :  { %1994 = vtanh.f32 %v1008_v56 }
 0x56c   :  { %1996 = vtanh.f32 %v1009_v55 }
 0x56d   :  { %1998 = vrcp.f32 %v989_v27 }
 0x56e   :  { %2000 = vrcp.f32 %v991_v58 }
 0x575   :  { %v1995_v59 = vpop.eup %1994 }
 0x576   :  { %v1997_v61 = vpop.eup %1996  ;;  %v1014_v62 = vrot.slane %v1995_v59, 1 }
 0x577   :  { %v1015_v63 = vrot.slane %v1997_v61, 1  ;;  %v1999_v29 = vpop.eup %1998 }
 0x578   :  { %v1018_v25 = vsub.f32 %v2537_v8, %v1014_v62  ;;  %v2001_v31 = vpop.eup %2000 }
 0x579   :  { %v1019_v60 = vsub.f32 %v2539_v9, %v1015_v63  ;;  %v1041_v63 = vunpack.c.h.bf16 %v1035_v10 }
 0x57a   :  { %v1022_v28 = vrot.slane %v1018_v25, 7 }
 0x57b   :  { %v1023_v30 = vrot.slane %v1019_v60, 7 }
 0x57c   :  { %v1026_v32 = vmul.f32 %v1999_v29, %v1022_v28 }
 0x57d   :  { %v1027_v33 = vmul.f32 %v2001_v31, %v1023_v30 }
 0x57e   :  { %v2693_v34 = vadd.f32 %v1995_v59, %v1026_v32 }
 0x57f   :  { %v2695_v37 = vadd.f32 %v1997_v61, %v1027_v33  ;;  %v1038_v61 = vunpack.c.h.bf16 %v1033_v7 }
 0x580   :  { %1031 = vst.msk [vmem:[#allocation3] sm:$0x10] %vm1030_vm6, %v2693_v34  ;;  %v1043_v39 = vpack.c.bf16 %v2693_v34, %v2693_v34 }
 0x581   :  { %1032 = vst.msk [vmem:[#allocation3 + $0x8] sm:$0x10] %vm1030_vm6, %v2695_v37  ;;  %v1044_v8 = vpack.c.bf16 %v2695_v37, %v2695_v37 }
 0x582   :  { %v1047_v9 = vunpack.c.l.b16 %v1043_v39 }
 0x583   :  { %v1048_v40 = vunpack.c.l.b16 %v1044_v8  ;;  %v2773_v8 = vld [vmem:[%s2883_s2] ss:$0 sm:$0xff] }
 0x584   :  { %v1049_v38 = vrot.slane %v1047_v9, 4 }
 0x585   :  { %v1050_v47 = vrot.slane %v1048_v40, 3  ;;  %v1034_v40 = vld [vmem:[%s2881_s0 + $0x8] sm:$0x4] }
 0x587   :  { %v1051_v45 = vsel %vm331_vm1, %v1050_v47, %v1049_v38  ;;  %v1036_v38 = vld [vmem:[%s2881_s0 + $0x14] sm:$0x4]  ;;  %v1039_v47 = vunpack.c.l.bf16 %v1034_v40 }
 0x588   :  { %v1052_v41 = vpack.c.b16 %v1051_v45, %v1051_v45  ;;  %v1042_v7 = vunpack.c.l.bf16 %v1036_v38 }
 0x58a   :  { %1087 = vmatmul.mubr.bf16.vlgmr.msra.gmra.mrb[20].mxu0 %v1052_v41  ;;  %1821 = vmatmul.mubr.bf16.vlgmr.msra.gmra.mrb[20].mxu1 %v1052_v41 }
 0x58b   :  { %1228 = vmatpush1.bf16.msra.mxu0 %v2551_v15  ;;  %1825 = vmatpush3.bf16.msra.mxu1 %v2557_v16 }
 0x58c   :  { %1229 = vmatprep.subr.bf16.mxu0 %v2563_v18  ;;  %1826 = vmatprep.subr.bf16.mxu1 %v2111_v2 }
 0x58d   :  { %1259 = vmatprep.mubr.bf16.mxu0 %v2112_v3  ;;  %1840 = vmatprep.mubr.msk.bf16.mxu1 %vm2113_vm0, %v2111_v2 }
 0x58f   :  { %1230 = vmatpush1.bf16.msra.mxu0 %v2573_v19  ;;  %1827 = vmatpush3.bf16.msra.mxu1 %v2579_v21 }
 0x590   :  { %1231 = vmatprep.subr.bf16.mxu0 %v2585_v22  ;;  %1828 = vmatprep.subr.bf16.mxu1 %v2111_v2 }
 0x593   :  { %1232 = vmatpush1.bf16.msra.mxu0 %v2592_v43  ;;  %1829 = vmatpush3.bf16.msra.mxu1 %v2598_v44 }
 0x594   :  { %1233 = vmatprep.subr.bf16.mxu0 %v2604_v46  ;;  %1830 = vmatprep.subr.bf16.mxu1 %v2111_v2 }
 0x597   :  { %1234 = vmatpush1.bf16.msra.mxu0 %v2611_v48  ;;  %1831 = vmatpush3.bf16.msra.mxu1 %v2723_v42 }
 0x598   :  { %1235 = vmatprep.subr.bf16.mxu0 %v2618_v23  ;;  %1832 = vmatprep.subr.bf16.mxu1 %v2111_v2 }
 0x59b   :  { %1236 = vmatpush1.bf16.msra.mxu0 %v2625_v49  ;;  %1833 = vmatpush3.bf16.msra.mxu1 %v2732_v1 }
 0x59c   :  { %1237 = vmatprep.subr.bf16.mxu0 %v2632_v17  ;;  %1834 = vmatprep.subr.bf16.mxu1 %v2111_v2 }
 0x59f   :  { %1238 = vmatpush1.bf16.msra.mxu0 %v2639_v50  ;;  %1835 = vmatpush3.bf16.msra.mxu1 %v2741_v4 }
 0x5a0   :  { %1239 = vmatprep.subr.bf16.mxu0 %v2646_v20  ;;  %1836 = vmatprep.subr.bf16.mxu1 %v2111_v2 }
 0x5a3   :  { %1240 = vmatpush1.bf16.msra.mxu0 %v2653_v51  ;;  %1837 = vmatpush3.bf16.msra.mxu1 %v2750_v5 }
 0x5a4   :  { %1241 = vmatprep.subr.bf16.mxu0 %v2660_v24  ;;  %1838 = vmatprep.subr.bf16.mxu1 %v2111_v2 }
 0x5a7   :  { %1242 = vmatpush1.bf16.msra.mxu0 %v2667_v53  ;;  %1839 = vmatpush3.bf16.msra.mxu1 %v2759_v6 }
 0x5a8   :  { %1400 = vmatprep.subr.bf16.mxu0 %v2674_v26  ;;  %1844 = vmatprep.subr.bf16.mxu1 %v2111_v2 }
 0x65d   :  { %v1088_v11 = vpop.f32.mrb[20].mxu0  ;;  %v1129_v12 = vpop.f32.mrb[20].mxu1 }
 0x65e   :  { %v1137_v13 = vrot.slane %v1088_v11, 3  ;;  %v1139_v0 = vrot.slane %v1088_v11, 4  ;;  %v1090_v14 = vpop.f32.mrb[21].mxu0  ;;  %v1822_v54 = vpop.f32.mrb[21].mxu1  ;;  %v1173_v9 = vadd.f32 %v2773_v8, %v1129_v12 }
 0x65f   :  { %v1092_v56 = vpop.f32.mrb[22].mxu0  ;;  %v1132_v26 = vpop.f32.mrb[22].mxu1  ;;  %v1138_v62 = vrot.slane %v1090_v14, 3  ;;  %v1140_v25 = vrot.slane %v1090_v14, 4 }
 0x660   :  { %v1145_v52 = vadd.f32 %v1137_v13, %v1037_v35  ;;  %v1147_v55 = vadd.f32 %v1139_v0, %v1040_v36  ;;  %v1093_v57 = vpop.f32.mrb[23].mxu0  ;;  %v1823_v27 = vpop.f32.mrb[23].mxu1  ;;  %v1175_v45 = vrot.slane %v1173_v9, 3  ;;  %v1176_v10 = vrot.slane %v1173_v9, 4 }
 0x661   :  { %v1146_v60 = vadd.f32 %v1138_v62, %v1038_v61  ;;  %v1148_v29 = vadd.f32 %v1140_v25, %v1041_v63 }
 0x662   :  { %v1620_v58 = vmul.f32 -1.442695, %v1145_v52  ;;  %v1622_v59 = vmul.f32 -1.442695, %v1147_v55 }
 0x663   :  { %v1621_v33 = vmul.f32 -1.442695, %v1146_v60  ;;  %v1623_v39 = vmul.f32 -1.442695, %v1148_v29 }
 0x664   :  { %2002 = vpow2.f32 %v1620_v58 }
 0x665   :  { %2004 = vpow2.f32 %v1622_v59 }
 0x66e   :  { %v2003_v28 = vpop.eup %2002 }
 0x66f   :  { %v2005_v30 = vpop.eup %2004  ;;  %v1161_v31 = vadd.f32 1.0, %v2003_v28 }
 0x670   :  { %v1163_v32 = vadd.f32 1.0, %v2005_v30 }
 0x671   :  { %2006 = vrcp.f32 %v1161_v31 }
 0x672   :  { %2008 = vrcp.f32 %v1163_v32 }
 0x673   :  { %2010 = vpow2.f32 %v1621_v33 }
 0x674   :  { %2012 = vpow2.f32 %v1623_v39 }
 0x67b   :  { %v2007_v41 = vpop.eup %2006 }
 0x67c   :  { %v2009_v35 = vpop.eup %2008  ;;  %v1179_v36 = vmul.f32 %v2007_v41, %v1175_v45 }
 0x67d   :  { %v1180_v11 = vmul.f32 %v2009_v35, %v1176_v10  ;;  %v2011_v0 = vpop.eup %2010  ;;  %v1207_v10 = vld [vmem:[%s2881_s0 + $0x8] sm:$0x8]  ;;  %v1209_v35 = vld [vmem:[%s2881_s0 + $0x14] sm:$0x8] }
 0x67e   :  { %v1181_v13 = vadd.f32 %v1179_v36, %v1039_v47  ;;  %v2013_v14 = vpop.eup %2012  ;;  %v1162_v54 = vadd.f32 1.0, %v2011_v0  ;;  %v1212_v36 = vunpack.c.l.bf16 %v1207_v10  ;;  %v1215_v0 = vunpack.c.l.bf16 %v1209_v35 }
 0x67f   :  { %v1182_v12 = vadd.f32 %v1180_v11, %v1042_v7  ;;  %v1164_v56 = vadd.f32 1.0, %v2013_v14 }
 0x680   :  { %2014 = vtanh.f32 %v1181_v13 }
 0x681   :  { %2016 = vtanh.f32 %v1182_v12 }
 0x682   :  { %2018 = vrcp.f32 %v1162_v54 }
 0x683   :  { %2020 = vrcp.f32 %v1164_v56 }
 0x68a   :  { %v2015_v26 = vpop.eup %2014 }
 0x68b   :  { %v2017_v52 = vpop.eup %2016  ;;  %v1187_v55 = vrot.slane %v2015_v26, 1 }
 0x68c   :  { %v1188_v57 = vrot.slane %v2017_v52, 1  ;;  %v2019_v61 = vpop.eup %2018 }
 0x68d   :  { %v1191_v27 = vsub.f32 %v2693_v34, %v1187_v55  ;;  %v2021_v63 = vpop.eup %2020 }
 0x68e   :  { %v1192_v58 = vsub.f32 %v2695_v37, %v1188_v57 }
 0x68f   :  { %v1195_v59 = vrot.slane %v1191_v27, 7 }
 0x690   :  { %v1196_v62 = vrot.slane %v1192_v58, 7 }
 0x691   :  { %v1199_v25 = vmul.f32 %v2019_v61, %v1195_v59 }
 0x692   :  { %v1200_v60 = vmul.f32 %v2021_v63, %v1196_v62 }
 0x693   :  { %v2784_v28 = vadd.f32 %v2015_v26, %v1199_v25 }
 0x694   :  { %v2786_v29 = vadd.f32 %v2017_v52, %v1200_v60 }
 0x695   :  { %1204 = vst.msk [vmem:[#allocation3] sm:$0x20] %vm1203_vm7, %v2784_v28  ;;  %v1216_v30 = vpack.c.bf16 %v2784_v28, %v2784_v28 }
 0x696   :  { %1205 = vst.msk [vmem:[#allocation3 + $0x8] sm:$0x20] %vm1203_vm7, %v2786_v29  ;;  %v1217_v34 = vpack.c.bf16 %v2786_v29, %v2786_v29 }
 0x697   :  { %v1220_v37 = vunpack.c.l.b16 %v1216_v30 }
 0x698   :  { %v1221_v31 = vunpack.c.l.b16 %v1217_v34 }
 0x699   :  { %v1222_v32 = vrot.slane %v1220_v37, 5 }
 0x69a   :  { %v1223_v33 = vrot.slane %v1221_v31, 4 }
 0x69c   :  { %v1224_v39 = vsel %vm331_vm1, %v1223_v33, %v1222_v32 }
 0x69d   :  { %v1225_v9 = vpack.c.b16 %v1224_v39, %v1224_v39 }
 0x69f   :  { %1260 = vmatmul.mubr.bf16.vlgmr.msra.gmra.mrb[24].mxu0 %v1225_v9  ;;  %1841 = vmatmul.mubr.bf16.vlgmr.msra.gmra.mrb[24].mxu1 %v1225_v9 }
 0x6a0   :  { %1401 = vmatpush1.bf16.msra.mxu0 %v2551_v15  ;;  %1845 = vmatpush3.bf16.msra.mxu1 %v2557_v16  ;;  %v1208_v15 = vld [vmem:[%s2881_s0 + $0xc] sm:$0x88] }
 0x6a1   :  { %1402 = vmatprep.subr.bf16.mxu0 %v2563_v18  ;;  %1846 = vmatprep.subr.bf16.mxu1 %v2111_v2  ;;  %v1213_v18 = vunpack.c.l.bf16 %v1208_v15 }
 0x6a2   :  { %1432 = vmatprep.mubr.bf16.mxu0 %v2112_v3  ;;  %1860 = vmatprep.mubr.msk.bf16.mxu1 %vm2113_vm0, %v2111_v2  ;;  %v1206_v3 = vld [vmem:[%s2881_s0] sm:$0x88] }
 0x6a3   :  { %v1210_v16 = vunpack.c.l.bf16 %v1206_v3 }
 0x6a4   :  { %1403 = vmatpush1.bf16.msra.mxu0 %v2573_v19  ;;  %1847 = vmatpush3.bf16.msra.mxu1 %v2579_v21 }
 0x6a5   :  { %1404 = vmatprep.subr.bf16.mxu0 %v2585_v22  ;;  %1848 = vmatprep.subr.bf16.mxu1 %v2111_v2 }
 0x6a8   :  { %1405 = vmatpush1.bf16.msra.mxu0 %v2592_v43  ;;  %1849 = vmatpush3.bf16.msra.mxu1 %v2598_v44 }
 0x6a9   :  { %1406 = vmatprep.subr.bf16.mxu0 %v2604_v46  ;;  %1850 = vmatprep.subr.bf16.mxu1 %v2111_v2 }
 0x6ac   :  { %1407 = vmatpush1.bf16.msra.mxu0 %v2611_v48  ;;  %1851 = vmatpush3.bf16.msra.mxu1 %v2723_v42  ;;  %v1214_v42 = vunpack.c.h.bf16 %v1208_v15 }
 0x6ad   :  { %1408 = vmatprep.subr.bf16.mxu0 %v2618_v23  ;;  %1852 = vmatprep.subr.bf16.mxu1 %v2111_v2 }
 0x6b0   :  { %1409 = vmatpush1.bf16.msra.mxu0 %v2625_v49  ;;  %1853 = vmatpush3.bf16.msra.mxu1 %v2732_v1 }
 0x6b1   :  { %1410 = vmatprep.subr.bf16.mxu0 %v2632_v17  ;;  %1854 = vmatprep.subr.bf16.mxu1 %v2111_v2 }
 0x6b4   :  { %1411 = vmatpush1.bf16.msra.mxu0 %v2639_v50  ;;  %1855 = vmatpush3.bf16.msra.mxu1 %v2741_v4 }
 0x6b5   :  { %1412 = vmatprep.subr.bf16.mxu0 %v2646_v20  ;;  %1856 = vmatprep.subr.bf16.mxu1 %v2111_v2 }
 0x6b8   :  { %1413 = vmatpush1.bf16.msra.mxu0 %v2653_v51  ;;  %1857 = vmatpush3.bf16.msra.mxu1 %v2750_v5 }
 0x6b9   :  { %1414 = vmatprep.subr.bf16.mxu0 %v2660_v24  ;;  %1858 = vmatprep.subr.bf16.mxu1 %v2111_v2  ;;  %v1211_v24 = vunpack.c.h.bf16 %v1206_v3 }
 0x6bc   :  { %1415 = vmatpush1.bf16.msra.mxu0 %v2667_v53  ;;  %1859 = vmatpush3.bf16.msra.mxu1 %v2759_v6 }
 0x772   :  { %v1261_v19 = vpop.f32.mrb[24].mxu0  ;;  %v1302_v21 = vpop.f32.mrb[24].mxu1 }
 0x773   :  { %v1310_v22 = vrot.slane %v1261_v19, 2  ;;  %v1312_v43 = vrot.slane %v1261_v19, 3  ;;  %v1263_v44 = vpop.f32.mrb[25].mxu0  ;;  %v1842_v2 = vpop.f32.mrb[25].mxu1  ;;  %v1346_v7 = vadd.f32 %v2773_v8, %v1302_v21 }
 0x774   :  { %v1265_v46 = vpop.f32.mrb[26].mxu0  ;;  %v1305_v48 = vpop.f32.mrb[26].mxu1  ;;  %v1311_v53 = vrot.slane %v1263_v44, 2  ;;  %v1313_v1 = vrot.slane %v1263_v44, 3 }
 0x775   :  { %v1318_v23 = vadd.f32 %v1310_v22, %v1210_v16  ;;  %v1320_v49 = vadd.f32 %v1312_v43, %v1213_v18  ;;  %v1266_v17 = vpop.f32.mrb[27].mxu0  ;;  %v1843_v50 = vpop.f32.mrb[27].mxu1  ;;  %v1348_v11 = vrot.slane %v1346_v7, 2  ;;  %v1349_v12 = vrot.slane %v1346_v7, 3  ;;  %v1379_v22 = vld [vmem:[%s2881_s0] sm:$0x88] }
 0x776   :  { %v1319_v4 = vadd.f32 %v1311_v53, %v1211_v24  ;;  %v1321_v6 = vadd.f32 %v1313_v1, %v1214_v42  ;;  %v1381_v43 = vld [vmem:[%s2881_s0 + $0xc] sm:$0x88]  ;;  %v1383_v44 = vunpack.c.l.bf16 %v1379_v22 }
 0x777   :  { %v1624_v20 = vmul.f32 -1.442695, %v1318_v23  ;;  %v1626_v51 = vmul.f32 -1.442695, %v1320_v49  ;;  %v1386_v2 = vunpack.c.l.bf16 %v1381_v43 }
 0x778   :  { %v1625_v45 = vmul.f32 -1.442695, %v1319_v4  ;;  %v1627_v41 = vmul.f32 -1.442695, %v1321_v6  ;;  %v1384_v6 = vunpack.c.h.bf16 %v1379_v22 }
 0x779   :  { %2022 = vpow2.f32 %v1624_v20 }
 0x77a   :  { %2024 = vpow2.f32 %v1626_v51 }
 0x783   :  { %v2023_v5 = vpop.eup %2022 }
 0x784   :  { %v2025_v40 = vpop.eup %2024  ;;  %v1334_v38 = vadd.f32 1.0, %v2023_v5 }
 0x785   :  { %v1336_v47 = vadd.f32 1.0, %v2025_v40 }
 0x786   :  { %2026 = vrcp.f32 %v1334_v38  ;;  %v1387_v38 = vunpack.c.h.bf16 %v1381_v43 }
 0x787   :  { %2028 = vrcp.f32 %v1336_v47 }
 0x788   :  { %2030 = vpow2.f32 %v1625_v45 }
 0x789   :  { %2032 = vpow2.f32 %v1627_v41 }
 0x790   :  { %v2027_v13 = vpop.eup %2026 }
 0x791   :  { %v2029_v14 = vpop.eup %2028  ;;  %v1352_v54 = vmul.f32 %v2027_v13, %v1348_v11 }
 0x792   :  { %v1353_v56 = vmul.f32 %v2029_v14, %v1349_v12  ;;  %v2031_v52 = vpop.eup %2030  ;;  %v1380_v12 = vld [vmem:[%s2881_s0 + $0x8] sm:$0x8]  ;;  %v1382_v14 = vld [vmem:[%s2881_s0 + $0x14] sm:$0x8]  ;;  %s2114_s0 = smov [#allocation3]  }
 0x793   :  { %v1354_v26 = vadd.f32 %v1352_v54, %v1212_v36  ;;  %v2033_v57 = vpop.eup %2032  ;;  %v1335_v27 = vadd.f32 1.0, %v2031_v52  ;;  %v1385_v54 = vunpack.c.l.bf16 %v1380_v12  ;;  %v1388_v52 = vunpack.c.l.bf16 %v1382_v14  ;;  %s1564_s12 = sshll.u32 %s2114_s0, 4  ;;  %s1565_s12 = int_to_ptr.vmem [resolvable:$true] %s1564_s12 }
 0x794   :  { %v1355_v55 = vadd.f32 %v1353_v56, %v1215_v0  ;;  %v1337_v58 = vadd.f32 1.0, %v2033_v57  ;;  %s2087_s13 = scalar_lea.vmem %s1565_s12, 256  ;;  %p2092_p1 = scmp.lt.s32.totalorder %s1565_s12, %s1565_s12 }
 0x795   :  { %2034 = vtanh.f32 %v1354_v26  ;;  %p2088_p0 = scmp.ne.s32.totalorder %s1565_s12, %s2087_s13  ;;  %p2093_p2 = scmp.lt.s32.totalorder %s2087_s13, %s2087_s13 }
 0x796   :  { %2036 = vtanh.f32 %v1355_v55 }
 0x797   :  { %2038 = vrcp.f32 %v1335_v27  ;;  %p2094_p3 = por %p2093_p2, %p2092_p1 }
 0x798   :  { %2040 = vrcp.f32 %v1337_v58 }
 0x799   :  { %p2095_p4 = pnand %p2094_p3, %p2088_p0 }
 0x79f   :  { %v2035_v59 = vpop.eup %2034 }
 0x7a0   :  { %v2037_v61 = vpop.eup %2036  ;;  %v1360_v62 = vrot.slane %v2035_v59, 1 }
 0x7a1   :  { %v1361_v63 = vrot.slane %v2037_v61, 1  ;;  %v2039_v34 = vpop.eup %2038 }
 0x7a2   :  { %v1364_v25 = vsub.f32 %v2784_v28, %v1360_v62  ;;  %v2041_v31 = vpop.eup %2040 }
 0x7a3   :  { %v1365_v60 = vsub.f32 %v2786_v29, %v1361_v63 }
 0x7a4   :  { %v1368_v30 = vrot.slane %v1364_v25, 7 }
 0x7a5   :  { %v1369_v37 = vrot.slane %v1365_v60, 7 }
 0x7a6   :  { %v1372_v32 = vmul.f32 %v2039_v34, %v1368_v30 }
 0x7a7   :  { %v1373_v33 = vmul.f32 %v2041_v31, %v1369_v37 }
 0x7a8   :  { %v2843_v39 = vadd.f32 %v2035_v59, %v1372_v32 }
 0x7a9   :  { %v2845_v9 = vadd.f32 %v2037_v61, %v1373_v33 }
 0x7aa   :  { %1377 = vst.msk [vmem:[#allocation3] sm:$0x40] %vm1376_vm8, %v2843_v39  ;;  %v1389_v3 = vpack.c.bf16 %v2843_v39, %v2843_v39 }
 0x7ab   :  { %1378 = vst.msk [vmem:[#allocation3 + $0x8] sm:$0x40] %vm1376_vm8, %v2845_v9  ;;  %v1390_v28 = vpack.c.bf16 %v2845_v9, %v2845_v9 }
 0x7ac   :  { %v1393_v29 = vunpack.c.l.b16 %v1389_v3 }
 0x7ad   :  { %v1394_v15 = vunpack.c.l.b16 %v1390_v28 }
 0x7ae   :  { %v1395_v16 = vrot.slane %v1393_v29, 6 }
 0x7af   :  { %v1396_v18 = vrot.slane %v1394_v15, 5 }
 0x7b1   :  { %v1397_v19 = vsel %vm331_vm1, %v1396_v18, %v1395_v16 }
 0x7b2   :  { %v1398_v21 = vpack.c.b16 %v1397_v19, %v1397_v19 }
 0x7b4   :  { %1433 = vmatmul.mubr.bf16.vlgmr.msra.gmra.mrb[28].mxu0 %v1398_v21  ;;  %1861 = vmatmul.mubr.bf16.vlgmr.msra.gmra.mrb[28].mxu1 %v1398_v21 }
 0x887   :  { %v1434_v46 = vpop.f32.mrb[28].mxu0  ;;  %v1475_v48 = vpop.f32.mrb[28].mxu1 }
 0x888   :  { %v1483_v23 = vrot.slane %v1434_v46, 1  ;;  %v1485_v49 = vrot.slane %v1434_v46, 2  ;;  %v1436_v17 = vpop.f32.mrb[29].mxu0  ;;  %v1862_v50 = vpop.f32.mrb[29].mxu1  ;;  %v1519_v0 = vadd.f32 %v2773_v8, %v1475_v48 }
 0x889   :  { %v1438_v20 = vpop.f32.mrb[30].mxu0  ;;  %v1478_v51 = vpop.f32.mrb[30].mxu1  ;;  %v1484_v40 = vrot.slane %v1436_v17, 1  ;;  %v1486_v47 = vrot.slane %v1436_v17, 2 }
 0x88a   :  { %v1491_v24 = vadd.f32 %v1483_v23, %v1383_v44  ;;  %v1493_v53 = vadd.f32 %v1485_v49, %v1386_v2  ;;  %v1439_v42 = vpop.f32.mrb[31].mxu0  ;;  %v1863_v1 = vpop.f32.mrb[31].mxu1  ;;  %v1521_v56 = vrot.slane %v1519_v0, 1  ;;  %v1522_v55 = vrot.slane %v1519_v0, 2 }
 0x88b   :  { %v1492_v45 = vadd.f32 %v1484_v40, %v1384_v6  ;;  %v1494_v7 = vadd.f32 %v1486_v47, %v1387_v38 }
 0x88c   :  { %v1628_v4 = vmul.f32 -1.442695, %v1491_v24  ;;  %v1630_v5 = vmul.f32 -1.442695, %v1493_v53 }
 0x88d   :  { %v1629_v11 = vmul.f32 -1.442695, %v1492_v45  ;;  %v1631_v13 = vmul.f32 -1.442695, %v1494_v7 }
 0x88e   :  { %2042 = vpow2.f32 %v1628_v4 }
 0x88f   :  { %2044 = vpow2.f32 %v1630_v5 }
 0x898   :  { %v2043_v41 = vpop.eup %2042 }
 0x899   :  { %v2045_v10 = vpop.eup %2044  ;;  %v1507_v35 = vadd.f32 1.0, %v2043_v41 }
 0x89a   :  { %v1509_v36 = vadd.f32 1.0, %v2045_v10 }
 0x89b   :  { %2046 = vrcp.f32 %v1507_v35 }
 0x89c   :  { %2048 = vrcp.f32 %v1509_v36 }
 0x89d   :  { %2050 = vpow2.f32 %v1629_v11 }
 0x89e   :  { %2052 = vpow2.f32 %v1631_v13 }
 0x8a5   :  { %v2047_v26 = vpop.eup %2046 }
 0x8a6   :  { %v2049_v57 = vpop.eup %2048  ;;  %v1525_v27 = vmul.f32 %v2047_v26, %v1521_v56 }
 0x8a7   :  { %v1526_v58 = vmul.f32 %v2049_v57, %v1522_v55  ;;  %v2051_v61 = vpop.eup %2050 }
 0x8a8   :  { %v1527_v59 = vadd.f32 %v1525_v27, %v1385_v54  ;;  %v2053_v62 = vpop.eup %2052  ;;  %v1508_v63 = vadd.f32 1.0, %v2051_v61 }
 0x8a9   :  { %v1528_v8 = vadd.f32 %v1526_v58, %v1388_v52  ;;  %v1510_v25 = vadd.f32 1.0, %v2053_v62 }
 0x8aa   :  { %2054 = vtanh.f32 %v1527_v59 }
 0x8ab   :  { %2056 = vtanh.f32 %v1528_v8 }
 0x8ac   :  { %2058 = vrcp.f32 %v1508_v63 }
 0x8ad   :  { %2060 = vrcp.f32 %v1510_v25 }
 0x8b4   :  { %v2055_v60 = vpop.eup %2054 }
 0x8b5   :  { %v2057_v30 = vpop.eup %2056  ;;  %v1533_v34 = vrot.slane %v2055_v60, 1 }
 0x8b6   :  { %v1534_v37 = vrot.slane %v2057_v30, 1  ;;  %v2059_v3 = vpop.eup %2058 }
 0x8b7   :  { %v1537_v31 = vsub.f32 %v2843_v39, %v1533_v34  ;;  %v2061_v29 = vpop.eup %2060 }
 0x8b8   :  { %v1538_v32 = vsub.f32 %v2845_v9, %v1534_v37 }
 0x8b9   :  { %v1541_v33 = vrot.slane %v1537_v31, 7 }
 0x8ba   :  { %v1542_v28 = vrot.slane %v1538_v32, 7 }
 0x8bb   :  { %v1545_v15 = vmul.f32 %v2059_v3, %v1541_v33 }
 0x8bc   :  { %v1546_v16 = vmul.f32 %v2061_v29, %v1542_v28 }
 0x8bd   :  { %v1547_v18 = vadd.f32 %v2055_v60, %v1545_v15 }
 0x8be   :  { %v1548_v19 = vadd.f32 %v2057_v30, %v1546_v16 }
 0x8bf   :  { %1550 = vst.msk [vmem:[#allocation3] sm:$0x80] %vm1549_vm9, %v1547_v18  ;;  %1557 = vst [vmem:[#allocation2 - $0x7] sm:$0x80] %v1547_v18 }
 0x8c0   :  { %1551 = vst.msk [vmem:[#allocation3 + $0x8] sm:$0x80] %vm1549_vm9, %v1548_v19  ;;  %v1554_v21 = vrot.slane %v1548_v19, 7 }
 0x8c1   :  { %2098 = shalt.err (!%p2095_p4)
}
 0x8c2   :  { %s2099_s16 = scalar_lea.hbm %s2884_s3, 256 }
 0x8c3   :  { %p2100_p5 = scmp.ne.s32.totalorder %s2884_s3, %s2099_s16  ;;  %p2103_p6 = scmp.lt.u32.totalorder %s2099_s16, %s2884_s3 }
 0x8c5   :  { %p2105_p7 = pnand %p2103_p6, %p2100_p5 }
 0x8c7   :  { %2108 = shalt.err (!%p2105_p7)
}
 0x8c8   :  { %s2115_s20 = smov 128   ;;  %s2116_s21 = smov 8   ;;  %1558 = vst [vmem:[#allocation2 + $0x1] sm:$0x1] %v1554_v21 }
 0x8c9   :  { %1570 = dma.vmem_to_hbm [thread:$0]  %s1565_s12, 256, %s2884_s3, [#allocation4], %s2115_s20, %s2115_s20, %s2116_s21  }
 0x8ca   :  { %2109 = dma.done.wait [#allocation4], 256  }
 0x8cb   :  { %2110 = vsyncadd [#allocation4], 4294967040 }
 0x8cc   :  { %1574 = vsyncpa [#allocation4], 1 }

</bundles_post_ra>
